<compile_context>
chip_gen: v7x
topology: tpu7x:2x2x1
jax: 0.10.0
libtpu: 0.0.40
codegen_flags: <defaults>
</compile_context>

<pallas_src>
import jax
import jax.numpy as jnp
from jax import lax
from jax.experimental import pallas as pl
from jax.experimental.pallas import tpu as pltpu


def _choose_tile(n, target):
    """Largest multiple-of-8 divisor of n that is <= target (or n itself)."""
    if n <= target:
        return n
    t = (target // 8) * 8
    while t >= 8:
        if n % t == 0:
            return t
        t -= 8
    return n  # fall back to a full (untileable) block; block == array dim is always legal


def pam_flash_kernel(x_q_ref, x_kv_ref, wq_ref, bq_ref, wk_ref, bk_ref,
                     wv_ref, bv_ref, gamma_ref, out_ref,
                     q_scr, m_scr, l_scr, acc_scr):
    ki = pl.program_id(2)

    # ---- per-(batch, q-tile) init: project q once, reset online-softmax state ----
    @pl.when(ki == 0)
    def _init():
        xq = x_q_ref[...].astype(jnp.bfloat16)
        q = jnp.dot(xq, wq_ref[...], preferred_element_type=jnp.float32) + bq_ref[...]
        q_scr[...] = q.astype(jnp.bfloat16)                       # (TQ, C8p)
        m_scr[...] = jnp.full(m_scr.shape, -jnp.inf, jnp.float32)
        l_scr[...] = jnp.zeros(l_scr.shape, jnp.float32)
        acc_scr[...] = jnp.zeros(acc_scr.shape, jnp.float32)

    # ---- project current kv tile (1x1 convs == per-pixel matmuls on the MXU) ----
    xkv = x_kv_ref[...].astype(jnp.bfloat16)
    k = (jnp.dot(xkv, wk_ref[...], preferred_element_type=jnp.float32)
         + bk_ref[...]).astype(jnp.bfloat16)                      # (TK, C8p)
    v = (jnp.dot(xkv, wv_ref[...], preferred_element_type=jnp.float32)
         + bv_ref[...]).astype(jnp.bfloat16)                      # (TK, C)

    # energy[i, j] = q_i . k_j  -- contract last dims directly, no k.T materialized.
    s = lax.dot_general(q_scr[...], k,
                        dimension_numbers=(((1,), (1,)), ((), ())),
                        preferred_element_type=jnp.float32)       # (TQ, TK) f32

    # ---- online softmax (f32) ----
    m_prev = m_scr[...]
    m_new = jnp.maximum(m_prev, jnp.max(s, axis=-1, keepdims=True))
    alpha = jnp.exp(m_prev - m_new)
    p = jnp.exp(s - m_new)
    l_scr[...] = alpha * l_scr[...] + jnp.sum(p, axis=-1, keepdims=True)
    acc_scr[...] = alpha * acc_scr[...] + jnp.dot(
        p.astype(jnp.bfloat16), v, preferred_element_type=jnp.float32)
    m_scr[...] = m_new

    # ---- finalize: normalize, scale by gamma, residual add (f32) ----
    @pl.when(ki == pl.num_programs(2) - 1)
    def _finalize():
        inv_l = pl.reciprocal(l_scr[...], approx=True)            # EUP slot, ~free
        out_ref[...] = gamma_ref[0] * (acc_scr[...] * inv_l) + x_q_ref[...]


def pam_forward(x_nchw, gamma, wq, bq, wk, bk, wv, bv, *, tq=256, tk=256):
    B, C, H, W = x_nchw.shape
    N = H * W
    C8 = wq.shape[1]
    # Pad query/key channels up to a lane-dense multiple of 128 (exact: padded
    # weight/bias columns are zero, so they contribute 0 to q.k).
    C8p = max(128, ((C8 + 127) // 128) * 128)

    TQ = _choose_tile(N, tq)
    TK = _choose_tile(N, tk)
    nq = N // TQ
    nk = N // TK

    # NCHW -> (B, N, C) channels-last, pixel index n = h*W + w (matches torch view).
    # TODO(synk): if the surrounding network can run channels-last, drop these two
    # transposes; they are pure HBM-bound XLA ops outside the kernel.
    x_nc = jnp.transpose(x_nchw, (0, 2, 3, 1)).reshape(B, N, C).astype(jnp.float32)

    f32, bf16 = jnp.float32, jnp.bfloat16
    wq_p = jnp.zeros((C, C8p), bf16).at[:, :C8].set(wq.astype(bf16))
    wk_p = jnp.zeros((C, C8p), bf16).at[:, :C8].set(wk.astype(bf16))
    bq_p = jnp.zeros((1, C8p), f32).at[:, :C8].set(bq.reshape(1, C8).astype(f32))
    bk_p = jnp.zeros((1, C8p), f32).at[:, :C8].set(bk.reshape(1, C8).astype(f32))
    wv_b = wv.astype(bf16)
    bv_f = bv.reshape(1, C).astype(f32)
    gamma_f = gamma.reshape(1).astype(f32)

    # Rough VMEM footprint (inputs/outputs are double-buffered by the pipeline).
    tile_bytes = (
        2 * (TQ * C * 4 + TK * C * 4 + TQ * C * 4                 # x_q, x_kv, out
             + 2 * C * C8p * 2 + C * C * 2                        # wq, wk, wv (bf16)
             + 2 * C8p * 4 + C * 4)                               # bq, bk, bv (f32)
        + TQ * C8p * 2 + 2 * TQ * 4 + TQ * C * 4                  # scratch: q, m, l, acc
    )
    vmem_limit = int(min(max(2 * tile_bytes + (4 << 20), 16 << 20), 64 << 20))

    cost = pl.CostEstimate(
        flops=int(2 * B * (N * C * C8p                            # q proj (once per q tile)
                           + nq * N * C * (C8p + C)               # k/v proj per (q, kv) tile
                           + N * N * (C8p + C))),                 # energy + attn@v
        transcendentals=int(B * N * N),
        bytes_accessed=int(4 * B * N * C * (2 + nq)),
    )

    out_nc = pl.pallas_call(
        pam_flash_kernel,
        out_shape=jax.ShapeDtypeStruct((B, N, C), jnp.float32),
        grid=(B, nq, nk),
        in_specs=[
            pl.BlockSpec((None, TQ, C), lambda b, qi, ki: (b, qi, 0)),   # x (query tile)
            pl.BlockSpec((None, TK, C), lambda b, qi, ki: (b, ki, 0)),   # x (kv tile)
            pl.BlockSpec((C, C8p), lambda b, qi, ki: (0, 0)),            # Wq (padded, bf16)
            pl.BlockSpec((1, C8p), lambda b, qi, ki: (0, 0)),            # bq (padded, f32)
            pl.BlockSpec((C, C8p), lambda b, qi, ki: (0, 0)),            # Wk (padded, bf16)
            pl.BlockSpec((1, C8p), lambda b, qi, ki: (0, 0)),            # bk (padded, f32)
            pl.BlockSpec((C, C), lambda b, qi, ki: (0, 0)),              # Wv (bf16)
            pl.BlockSpec((1, C), lambda b, qi, ki: (0, 0)),              # bv (f32)
            pl.BlockSpec(memory_space=pltpu.MemorySpace.SMEM),           # gamma (1,)
        ],
        out_specs=pl.BlockSpec((None, TQ, C), lambda b, qi, ki: (b, qi, 0)),
        scratch_shapes=[
            pltpu.VMEM((TQ, C8p), jnp.bfloat16),   # projected q tile (resident over kv)
            pltpu.VMEM((TQ, 1), jnp.float32),      # running max
            pltpu.VMEM((TQ, 1), jnp.float32),      # running denominator
            pltpu.VMEM((TQ, C), jnp.float32),      # output accumulator
        ],
        compiler_params=pltpu.CompilerParams(
            dimension_semantics=("parallel", "parallel", "arbitrary"),
            vmem_limit_bytes=vmem_limit,
        ),
        cost_estimate=cost,
    )(x_nc, x_nc, wq_p, bq_p, wk_p, bk_p, wv_b, bv_f, gamma_f)

    # (B, N, C) -> NCHW
    return jnp.transpose(out_nc.reshape(B, H, W, C), (0, 3, 1, 2))


def pam_reference(x_nchw, gamma, wq, bq, wk, bk, wv, bv):
    """Pure-JAX f32 reference, mirrors the PyTorch forward exactly."""
    B, C, H, W = x_nchw.shape
    N = H * W
    x_nc = jnp.transpose(x_nchw, (0, 2, 3, 1)).reshape(B, N, C)
    q = x_nc @ wq + bq                                   # (B, N, C8)  == proj_query
    k = x_nc @ wk + bk                                   # (B, N, C8)  == proj_key^T
    v = x_nc @ wv + bv                                   # (B, N, C)   == proj_value^T
    energy = jnp.einsum("bic,bjc->bij", q, k)
    attn = jax.nn.softmax(energy, axis=-1)
    out = jnp.einsum("bij,bjc->bic", attn, v)
    out = gamma[0] * out + x_nc
    return jnp.transpose(out.reshape(B, H, W, C), (0, 3, 1, 2))


if __name__ == "__main__":
    # Small shapes consistent with the module (in_dim >= 8 so in_dim // 8 >= 1).
    # N = 16*16 = 256 with tq=tk=128 -> a 2x2 q/kv tile grid, exercising the
    # multi-tile online-softmax path.
    B, C, H, W = 2, 16, 16, 16
    C8 = C // 8

    key = jax.random.PRNGKey(0)
    kx, kq, kbq, kk, kbk, kv, kbv = jax.random.split(key, 7)

    x = jax.random.normal(kx, (B, C, H, W), dtype=jnp.float32)
    # Conv2d 1x1 weights (C_out, C_in, 1, 1) are stored transposed as (C_in, C_out)
    # so the kernel computes x(N, C_in) @ W(C_in, C_out); biases are (C_out,).
    wq = 0.1 * jax.random.normal(kq, (C, C8), dtype=jnp.float32)
    bq = 0.1 * jax.random.normal(kbq, (C8,), dtype=jnp.float32)
    wk = 0.1 * jax.random.normal(kk, (C, C8), dtype=jnp.float32)
    bk = 0.1 * jax.random.normal(kbk, (C8,), dtype=jnp.float32)
    wv = 0.1 * jax.random.normal(kv, (C, C), dtype=jnp.float32)
    bv = 0.1 * jax.random.normal(kbv, (C,), dtype=jnp.float32)
    # Module __init__ sets gamma = 0 (out == x); use a nonzero value so the
    # attention path is actually exercised.
    gamma = jnp.array([0.5], dtype=jnp.float32)

    out = pam_forward(x, gamma, wq, bq, wk, bk, wv, bv, tq=128, tk=128)
    jax.block_until_ready(out)

    ref = pam_reference(x, gamma, wq, bq, wk, bk, wv, bv)
    assert out.shape == (B, C, H, W)
    err = float(jnp.max(jnp.abs(out - ref)))
    # bf16 MXU inputs with f32 accumulation and an f32 residual path: compare
    # against the f32 reference with a correspondingly relaxed tolerance.
    assert err < 1e-2, err

    print("KERNEL_OK")
</pallas_src>

<mosaic_0001>
module attributes {stable_mosaic.version = 11 : i64} {
  func.func @pam_flash_kernel(%arg0: i32, %arg1: i32, %arg2: i32, %arg3: memref<1x128x16xf32, #tpu.memory_space<vmem>>, %arg4: memref<1x128x16xf32, #tpu.memory_space<vmem>>, %arg5: memref<16x128xbf16, #tpu.memory_space<vmem>>, %arg6: memref<1x128xf32, #tpu.memory_space<vmem>>, %arg7: memref<16x128xbf16, #tpu.memory_space<vmem>>, %arg8: memref<1x128xf32, #tpu.memory_space<vmem>>, %arg9: memref<16x16xbf16, #tpu.memory_space<vmem>>, %arg10: memref<1x16xf32, #tpu.memory_space<vmem>>, %arg11: memref<1xf32, #tpu.memory_space<smem>>, %arg12: memref<1x128x16xf32, #tpu.memory_space<vmem>>, %arg13: memref<128x128xbf16, #tpu.memory_space<vmem>>, %arg14: memref<128x1xf32, #tpu.memory_space<vmem>>, %arg15: memref<128x1xf32, #tpu.memory_space<vmem>>, %arg16: memref<128x16xf32, #tpu.memory_space<vmem>>) attributes {dimension_semantics = [#tpu.dimension_semantics<parallel>, #tpu.dimension_semantics<parallel>, #tpu.dimension_semantics<arbitrary>], iteration_bounds = array<i64: 2, 2, 2>, scalar_prefetch = 0 : i64, scratch_operands = 4 : i64, tpu.core_type = #tpu.core_type<tc>, window_params = [{transform_indices = @transform_0, window_bounds = array<i64: 1, 128, 16>}, {transform_indices = @transform_1, window_bounds = array<i64: 1, 128, 16>}, {pipeline_mode = #tpu.pipeline_mode<synchronous>, transform_indices = @transform_2, window_bounds = array<i64: 16, 128>}, {pipeline_mode = #tpu.pipeline_mode<synchronous>, transform_indices = @transform_3, window_bounds = array<i64: 1, 128>}, {pipeline_mode = #tpu.pipeline_mode<synchronous>, transform_indices = @transform_4, window_bounds = array<i64: 16, 128>}, {pipeline_mode = #tpu.pipeline_mode<synchronous>, transform_indices = @transform_5, window_bounds = array<i64: 1, 128>}, {pipeline_mode = #tpu.pipeline_mode<synchronous>, transform_indices = @transform_6, window_bounds = array<i64: 16, 16>}, {pipeline_mode = #tpu.pipeline_mode<synchronous>, transform_indices = @transform_7, window_bounds = array<i64: 1, 16>}, {transform_indices = @transform_8, window_bounds = array<i64: 1>}, {transform_indices = @transform_9, window_bounds = array<i64: 1, 128, 16>}]} {
    %c0_i32 = arith.constant 0 : i32
    %0 = arith.cmpi eq, %arg2, %c0_i32 : i32
    %1 = arith.extui %0 : i1 to i32
    %c0_i32_0 = arith.constant 0 : i32
    %2 = arith.cmpi ne, %1, %c0_i32_0 : i32
    scf.if %2 {
      %c0_31 = arith.constant 0 : index
      %c0_32 = arith.constant 0 : index
      %c0_33 = arith.constant 0 : index
      %46 = vector.load %arg3[%c0_31, %c0_32, %c0_33] : memref<1x128x16xf32, #tpu.memory_space<vmem>>, vector<1x128x16xf32>
      %47 = vector.shape_cast %46 : vector<1x128x16xf32> to vector<128x16xf32>
      %48 = arith.truncf %47 : vector<128x16xf32> to vector<128x16xbf16>
      %c0_34 = arith.constant 0 : index
      %c0_35 = arith.constant 0 : index
      %49 = vector.load %arg5[%c0_34, %c0_35] : memref<16x128xbf16, #tpu.memory_space<vmem>>, vector<16x128xbf16>
      %cst_36 = arith.constant dense<0.000000e+00> : vector<128x128xf32>
      %50 = tpu.matmul %48, %49, %cst_36 {dimension_numbers = #tpu.dot_dimension_numbers<[1], [0], [0], [1], [0, 0, 1, 1], [], []>} : vector<128x16xbf16>, vector<16x128xbf16>, vector<128x128xf32> -> vector<128x128xf32>
      %c0_37 = arith.constant 0 : index
      %c0_38 = arith.constant 0 : index
      %51 = vector.load %arg6[%c0_37, %c0_38] : memref<1x128xf32, #tpu.memory_space<vmem>>, vector<1x128xf32>
      %52 = vector.broadcast %51 : vector<1x128xf32> to vector<128x128xf32>
      %53 = arith.addf %50, %52 : vector<128x128xf32>
      %54 = arith.truncf %53 : vector<128x128xf32> to vector<128x128xbf16>
      %c0_39 = arith.constant 0 : index
      %c0_40 = arith.constant 0 : index
      %55 = vector.load %arg13[%c0_39, %c0_40] : memref<128x128xbf16, #tpu.memory_space<vmem>>, vector<128x128xbf16>
      tpu.vector_store %arg13[%c0_39, %c0_40], %54 {strides = array<i32>} : memref<128x128xbf16, #tpu.memory_space<vmem>>, vector<128x128xbf16>,
      %cst_41 = arith.constant 0xFF800000 : f32
      %56 = vector.broadcast %cst_41 : f32 to vector<128x1xf32>
      %c0_42 = arith.constant 0 : index
      %c0_43 = arith.constant 0 : index
      %57 = vector.load %arg14[%c0_42, %c0_43] : memref<128x1xf32, #tpu.memory_space<vmem>>, vector<128x1xf32>
      tpu.vector_store %arg14[%c0_42, %c0_43], %56 {strides = array<i32>} : memref<128x1xf32, #tpu.memory_space<vmem>>, vector<128x1xf32>,
      %cst_44 = arith.constant 0.000000e+00 : f32
      %58 = vector.broadcast %cst_44 : f32 to vector<128x1xf32>
      %c0_45 = arith.constant 0 : index
      %c0_46 = arith.constant 0 : index
      %59 = vector.load %arg15[%c0_45, %c0_46] : memref<128x1xf32, #tpu.memory_space<vmem>>, vector<128x1xf32>
      tpu.vector_store %arg15[%c0_45, %c0_46], %58 {strides = array<i32>} : memref<128x1xf32, #tpu.memory_space<vmem>>, vector<128x1xf32>,
      %cst_47 = arith.constant 0.000000e+00 : f32
      %60 = vector.broadcast %cst_47 : f32 to vector<128x16xf32>
      %c0_48 = arith.constant 0 : index
      %c0_49 = arith.constant 0 : index
      %61 = vector.load %arg16[%c0_48, %c0_49] : memref<128x16xf32, #tpu.memory_space<vmem>>, vector<128x16xf32>
      tpu.vector_store %arg16[%c0_48, %c0_49], %60 {strides = array<i32>} : memref<128x16xf32, #tpu.memory_space<vmem>>, vector<128x16xf32>,
    } else {
    }
    %c0 = arith.constant 0 : index
    %c0_1 = arith.constant 0 : index
    %c0_2 = arith.constant 0 : index
    %3 = vector.load %arg4[%c0, %c0_1, %c0_2] : memref<1x128x16xf32, #tpu.memory_space<vmem>>, vector<1x128x16xf32>
    %4 = vector.shape_cast %3 : vector<1x128x16xf32> to vector<128x16xf32>
    %5 = arith.truncf %4 : vector<128x16xf32> to vector<128x16xbf16>
    %c0_3 = arith.constant 0 : index
    %c0_4 = arith.constant 0 : index
    %6 = vector.load %arg7[%c0_3, %c0_4] : memref<16x128xbf16, #tpu.memory_space<vmem>>, vector<16x128xbf16>
    %cst = arith.constant dense<0.000000e+00> : vector<128x128xf32>
    %7 = tpu.matmul %5, %6, %cst {dimension_numbers = #tpu.dot_dimension_numbers<[1], [0], [0], [1], [0, 0, 1, 1], [], []>} : vector<128x16xbf16>, vector<16x128xbf16>, vector<128x128xf32> -> vector<128x128xf32>
    %c0_5 = arith.constant 0 : index
    %c0_6 = arith.constant 0 : index
    %8 = vector.load %arg8[%c0_5, %c0_6] : memref<1x128xf32, #tpu.memory_space<vmem>>, vector<1x128xf32>
    %9 = vector.broadcast %8 : vector<1x128xf32> to vector<128x128xf32>
    %10 = arith.addf %7, %9 : vector<128x128xf32>
    %11 = arith.truncf %10 : vector<128x128xf32> to vector<128x128xbf16>
    %c0_7 = arith.constant 0 : index
    %c0_8 = arith.constant 0 : index
    %12 = vector.load %arg9[%c0_7, %c0_8] : memref<16x16xbf16, #tpu.memory_space<vmem>>, vector<16x16xbf16>
    %cst_9 = arith.constant dense<0.000000e+00> : vector<128x16xf32>
    %13 = tpu.matmul %5, %12, %cst_9 {dimension_numbers = #tpu.dot_dimension_numbers<[1], [0], [0], [1], [0, 0, 1, 1], [], []>} : vector<128x16xbf16>, vector<16x16xbf16>, vector<128x16xf32> -> vector<128x16xf32>
    %c0_10 = arith.constant 0 : index
    %c0_11 = arith.constant 0 : index
    %14 = vector.load %arg10[%c0_10, %c0_11] : memref<1x16xf32, #tpu.memory_space<vmem>>, vector<1x16xf32>
    %15 = vector.broadcast %14 : vector<1x16xf32> to vector<128x16xf32>
    %16 = arith.addf %13, %15 : vector<128x16xf32>
    %17 = arith.truncf %16 : vector<128x16xf32> to vector<128x16xbf16>
    %c0_12 = arith.constant 0 : index
    %c0_13 = arith.constant 0 : index
    %18 = vector.load %arg13[%c0_12, %c0_13] : memref<128x128xbf16, #tpu.memory_space<vmem>>, vector<128x128xbf16>
    %cst_14 = arith.constant dense<0.000000e+00> : vector<128x128xf32>
    %19 = tpu.matmul %18, %11, %cst_14 {dimension_numbers = #tpu.dot_dimension_numbers<[1], [1], [0], [0], [0, 0, 1, 0], [], []>} : vector<128x128xbf16>, vector<128x128xbf16>, vector<128x128xf32> -> vector<128x128xf32>
    %c0_15 = arith.constant 0 : index
    %c0_16 = arith.constant 0 : index
    %20 = vector.load %arg14[%c0_15, %c0_16] : memref<128x1xf32, #tpu.memory_space<vmem>>, vector<128x1xf32>
    %cst_17 = arith.constant dense<0xFF800000> : vector<128xf32>
    %21 = vector.multi_reduction <maximumf>, %19, %cst_17 [1] : vector<128x128xf32> to vector<128xf32>
    %22 = vector.shape_cast %21 : vector<128xf32> to vector<128x1xf32>
    %23 = arith.maximumf %20, %22 : vector<128x1xf32>
    %24 = arith.subf %20, %23 : vector<128x1xf32>
    %25 = math.exp %24 : vector<128x1xf32>
    %26 = vector.broadcast %23 : vector<128x1xf32> to vector<128x128xf32>
    %27 = arith.subf %19, %26 : vector<128x128xf32>
    %28 = math.exp %27 : vector<128x128xf32>
    %c0_18 = arith.constant 0 : index
    %c0_19 = arith.constant 0 : index
    %29 = vector.load %arg15[%c0_18, %c0_19] : memref<128x1xf32, #tpu.memory_space<vmem>>, vector<128x1xf32>
    %30 = arith.mulf %25, %29 : vector<128x1xf32>
    %cst_20 = arith.constant dense<0.000000e+00> : vector<128xf32>
    %31 = vector.multi_reduction <add>, %28, %cst_20 [1] : vector<128x128xf32> to vector<128xf32>
    %32 = vector.shape_cast %31 : vector<128xf32> to vector<128x1xf32>
    %33 = arith.addf %30, %32 : vector<128x1xf32>
    %c0_21 = arith.constant 0 : index
    %c0_22 = arith.constant 0 : index
    %34 = vector.load %arg15[%c0_21, %c0_22] : memref<128x1xf32, #tpu.memory_space<vmem>>, vector<128x1xf32>
    tpu.vector_store %arg15[%c0_21, %c0_22], %33 {strides = array<i32>} : memref<128x1xf32, #tpu.memory_space<vmem>>, vector<128x1xf32>,
    %c0_23 = arith.constant 0 : index
    %c0_24 = arith.constant 0 : index
    %35 = vector.load %arg16[%c0_23, %c0_24] : memref<128x16xf32, #tpu.memory_space<vmem>>, vector<128x16xf32>
    %36 = vector.broadcast %25 : vector<128x1xf32> to vector<128x16xf32>
    %37 = arith.mulf %36, %35 : vector<128x16xf32>
    %38 = arith.truncf %28 : vector<128x128xf32> to vector<128x128xbf16>
    %cst_25 = arith.constant dense<0.000000e+00> : vector<128x16xf32>
    %39 = tpu.matmul %38, %17, %cst_25 {dimension_numbers = #tpu.dot_dimension_numbers<[1], [0], [0], [1], [0, 0, 1, 1], [], []>} : vector<128x128xbf16>, vector<128x16xbf16>, vector<128x16xf32> -> vector<128x16xf32>
    %40 = arith.addf %37, %39 : vector<128x16xf32>
    %c0_26 = arith.constant 0 : index
    %c0_27 = arith.constant 0 : index
    %41 = vector.load %arg16[%c0_26, %c0_27] : memref<128x16xf32, #tpu.memory_space<vmem>>, vector<128x16xf32>
    tpu.vector_store %arg16[%c0_26, %c0_27], %40 {strides = array<i32>} : memref<128x16xf32, #tpu.memory_space<vmem>>, vector<128x16xf32>,
    %c0_28 = arith.constant 0 : index
    %c0_29 = arith.constant 0 : index
    %42 = vector.load %arg14[%c0_28, %c0_29] : memref<128x1xf32, #tpu.memory_space<vmem>>, vector<128x1xf32>
    tpu.vector_store %arg14[%c0_28, %c0_29], %23 {strides = array<i32>} : memref<128x1xf32, #tpu.memory_space<vmem>>, vector<128x1xf32>,
    %c1_i32 = arith.constant 1 : i32
    %43 = arith.cmpi eq, %arg2, %c1_i32 : i32
    %44 = arith.extui %43 : i1 to i32
    %c0_i32_30 = arith.constant 0 : i32
    %45 = arith.cmpi ne, %44, %c0_i32_30 : i32
    scf.if %45 {
      %c0_31 = arith.constant 0 : index
      %c0_32 = arith.constant 0 : index
      %46 = vector.load %arg15[%c0_31, %c0_32] : memref<128x1xf32, #tpu.memory_space<vmem>>, vector<128x1xf32>
      %47 = tpu.reciprocal %46 {approx = true} : vector<128x1xf32> -> vector<128x1xf32>
      %c0_33 = arith.constant 0 : index
      %48 = memref.load %arg11[%c0_33] : memref<1xf32, #tpu.memory_space<smem>>
      %c0_34 = arith.constant 0 : index
      %c0_35 = arith.constant 0 : index
      %49 = vector.load %arg16[%c0_34, %c0_35] : memref<128x16xf32, #tpu.memory_space<vmem>>, vector<128x16xf32>
      %50 = vector.broadcast %47 : vector<128x1xf32> to vector<128x16xf32>
      %51 = arith.mulf %49, %50 : vector<128x16xf32>
      %52 = vector.broadcast %48 : f32 to vector<128x16xf32>
      %53 = arith.mulf %52, %51 : vector<128x16xf32>
      %c0_36 = arith.constant 0 : index
      %c0_37 = arith.constant 0 : index
      %c0_38 = arith.constant 0 : index
      %54 = vector.load %arg3[%c0_36, %c0_37, %c0_38] : memref<1x128x16xf32, #tpu.memory_space<vmem>>, vector<1x128x16xf32>
      %55 = vector.shape_cast %54 : vector<1x128x16xf32> to vector<128x16xf32>
      %56 = arith.addf %53, %55 : vector<128x16xf32>
      %c0_39 = arith.constant 0 : index
      %c0_40 = arith.constant 0 : index
      %c0_41 = arith.constant 0 : index
      %57 = vector.load %arg12[%c0_39, %c0_40, %c0_41] : memref<1x128x16xf32, #tpu.memory_space<vmem>>, vector<1x128x16xf32>
      %58 = vector.shape_cast %57 : vector<1x128x16xf32> to vector<128x16xf32>
      %59 = vector.shape_cast %56 : vector<128x16xf32> to vector<1x128x16xf32>
      tpu.vector_store %arg12[%c0_39, %c0_40, %c0_41], %59 {strides = array<i32>} : memref<1x128x16xf32, #tpu.memory_space<vmem>>, vector<1x128x16xf32>,
    } else {
    }
    return
  }
  func.func @transform_0(%arg0: i32, %arg1: i32, %arg2: i32) -> (i32, i32, i32) {
    %c0_i32 = arith.constant 0 : i32
    %c0_i32_0 = arith.constant 0 : i32
    return %arg0, %arg1, %c0_i32 : i32, i32, i32
  }
  func.func @transform_1(%arg0: i32, %arg1: i32, %arg2: i32) -> (i32, i32, i32) {
    %c0_i32 = arith.constant 0 : i32
    %c0_i32_0 = arith.constant 0 : i32
    return %arg0, %arg2, %c0_i32 : i32, i32, i32
  }
  func.func @transform_2(%arg0: i32, %arg1: i32, %arg2: i32) -> (i32, i32) {
    %c0_i32 = arith.constant 0 : i32
    %c0_i32_0 = arith.constant 0 : i32
    %c0_i32_1 = arith.constant 0 : i32
    return %c0_i32, %c0_i32_0 : i32, i32
  }
  func.func @transform_3(%arg0: i32, %arg1: i32, %arg2: i32) -> (i32, i32) {
    %c0_i32 = arith.constant 0 : i32
    %c0_i32_0 = arith.constant 0 : i32
    %c0_i32_1 = arith.constant 0 : i32
    return %c0_i32, %c0_i32_0 : i32, i32
  }
  func.func @transform_4(%arg0: i32, %arg1: i32, %arg2: i32) -> (i32, i32) {
    %c0_i32 = arith.constant 0 : i32
    %c0_i32_0 = arith.constant 0 : i32
    %c0_i32_1 = arith.constant 0 : i32
    return %c0_i32, %c0_i32_0 : i32, i32
  }
  func.func @transform_5(%arg0: i32, %arg1: i32, %arg2: i32) -> (i32, i32) {
    %c0_i32 = arith.constant 0 : i32
    %c0_i32_0 = arith.constant 0 : i32
    %c0_i32_1 = arith.constant 0 : i32
    return %c0_i32, %c0_i32_0 : i32, i32
  }
  func.func @transform_6(%arg0: i32, %arg1: i32, %arg2: i32) -> (i32, i32) {
    %c0_i32 = arith.constant 0 : i32
    %c0_i32_0 = arith.constant 0 : i32
    %c0_i32_1 = arith.constant 0 : i32
    return %c0_i32, %c0_i32_0 : i32, i32
  }
  func.func @transform_7(%arg0: i32, %arg1: i32, %arg2: i32) -> (i32, i32) {
    %c0_i32 = arith.constant 0 : i32
    %c0_i32_0 = arith.constant 0 : i32
    %c0_i32_1 = arith.constant 0 : i32
    return %c0_i32, %c0_i32_0 : i32, i32
  }
  func.func @transform_8(%arg0: i32, %arg1: i32, %arg2: i32) -> i32 {
    %c0_i32 = arith.constant 0 : i32
    %c0_i32_0 = arith.constant 0 : i32
    return %c0_i32 : i32
  }
  func.func @transform_9(%arg0: i32, %arg1: i32, %arg2: i32) -> (i32, i32, i32) {
    %c0_i32 = arith.constant 0 : i32
    %c0_i32_0 = arith.constant 0 : i32
    return %arg0, %arg1, %c0_i32 : i32, i32, i32
  }
}

</mosaic_0001>

<bundles_post_ra>
// kernel: tpu_custom_call.1
= control target key start
LH: loop header
LB: loop body
LE: loop exit
PB: predicated region body
PF: predicated region fallthrough
CT: control target
= control target key end

     0   :  { %s2474_s11 = smov 0   ;;  %s2476_s12 = smov 0   ;;  %s3159_s0 = inlined_call_operand.vmem [shape: f32[2,256,16], index: 0, kind: input, shape index: {}]   ;;  %s3160_s1 = inlined_call_operand.vmem [shape: f32[2,256,16], index: 1, kind: input, shape index: {}]   ;;  %s3161_s2 = inlined_call_operand.vmem [shape: bf16[16,128], index: 2, kind: input, shape index: {}]   ;;  %s3162_s3 = inlined_call_operand.vmem [shape: f32[1,128], index: 3, kind: input, shape index: {}]   ;;  %s3163_s4 = inlined_call_operand.vmem [shape: bf16[16,128], index: 4, kind: input, shape index: {}]   ;;  %s3164_s5 = inlined_call_operand.vmem [shape: f32[1,128], index: 5, kind: input, shape index: {}]   ;;  %s3165_s6 = inlined_call_operand.vmem [shape: bf16[16,16], index: 6, kind: input, shape index: {}]   ;;  %s3166_s7 = inlined_call_operand.vmem [shape: f32[1,16], index: 7, kind: input, shape index: {}]   ;;  %s3167_s8 = inlined_call_operand.<no memory space> [shape: f32[1], index: 8, kind: input, shape index: {}]   ;;  %s3168_s9 = inlined_call_operand.vmem [shape: f32[2,256,16], index: 9, kind: output, shape index: {}]  }
   0x1   :  { %14 = sst [smem:[#allocation6]] %s3167_s8  ;;  %s2478_s13 = smov 0  }
   0x2   :  { %s2480_s14 = smov 0   ;;  %s2482_s15 = smov 0  }
   0x3   :  { %s2484_s16 = smov 0   ;;  %s2486_s17 = smov 0  }
   0x4 LB: > { %s32_s8 = sadd.s32 1, %s2403_s14  ;;  %s35_s18 = sadd.s32 1, %s2407_s15  ;;  %s2415_s17 = sphi %s2486_s17, %s20_s17   ;;  %s2411_s16 = sphi %s2484_s16, %s3178_s16   ;;  %s2407_s15 = sphi %s2482_s15, %s3177_s15   ;;  %s2403_s14 = sphi %s2480_s14, %s3176_s14   ;;  %s2399_s13 = sphi %s2478_s13, %s3175_s13   ;;  %s2395_s12 = sphi %s2476_s12, %s3174_s12   ;;  %s2391_s11 = sphi %s2474_s11, %s3173_s11  }
   0x5   : > { %p33_p0 = scmp.ge.s32.totalorder %s32_s8, 2  ;;  %p1975_p1 = scmp.ge.s32.totalorder %s2415_s17, 1 }
   0x6   : > { %p333_p2 = scmp.lt.s32.totalorder %s2415_s17, 9  ;;  %s39_s19 = sadd.s32 1, %s2411_s16 }
   0x7   : > { %s3180_s8 = smov (%p33_p0, %s32_s8), 0  ;;  %s3182_s18 = smov (!%p33_p0, %s35_s18), %s2407_s15 }
   0x8   : > { %p334_p3 = pnand %p1975_p1, %p333_p2  ;;  %p37_p4 = scmp.ge.s32.totalorder %s3182_s18, 2 }
   0x9   : > { %s1976_s20 = sshll.u32 (!%p334_p3), %s2395_s12, 4  ;;  %p387_p6 = scmp.lt.s32.totalorder (!%p334_p3), %s2399_s13, 1 }
   0xa   : > { %s3184_s18 = smov (%p37_p4, %s3182_s18), 0  ;;  %s3186_s19 = smov (!%p37_p4, %s39_s19), %s2411_s16 }
   0xb   : > { %3169 = sst [smem:[#allocation7_spill]] %s3184_s18  ;;  %p41_p5 = scmp.ge.s32.totalorder %s3186_s19, 2 }
   0xc   : > { %337 = sbr.rel (%p334_p3) target bundleno = 1443 (0x5a3), region = 56  ;;  %p389_p7 = scmp.lt.s32.totalorder (!%p334_p3), %s1976_s20, 31 }
   0xd   : > { %s3188_s19 = smov (%p41_p5, %s3186_s19), 0  ;;  %s1979_s21 = sshll.u32 (!%p334_p3), %s2391_s11, 4 }
   0xe   : > { %3170 = sst [smem:[#allocation8_spill]] %s3188_s19  ;;  %p399_p8 = scmp.lt.s32.totalorder (!%p334_p3), %s1979_s21, 31 }
   0xf   : > { %p1985_p9 = scmp.ne.s32.totalorder (!%p334_p3), %s2391_s11, 0 }
  0x13   : > { %s3190_s13 = smov (!%p387_p6, %s2399_s13), 1  ;;  %s3192_s20 = smov (!%p389_p7, %s1976_s20), 31 }
  0x14   : > { %s1977_s22 = sshll.u32 %s3190_s13, 5  ;;  %s3194_s21 = smov (!%p399_p8, %s1979_s21), 31  ;;  %v2258_v0 = vld [vmem:[%s3161_s2] sm:$0xff] (!%p1985_p9)   ;;  %vm460_vm0 = vcmask (!%p1985_p9), 130048   ;;  %vm598_vm1 = vcmask (!%p1985_p9), 7168   ;;  %v2417_v5 = vmov (!%p1985_p9), -inf  }
  0x15   : > { %s392_s23 = sadd.s32 %s1977_s22, %s3192_s20  ;;  %s402_s10 = sadd.s32 %s1977_s22, %s3194_s21  ;;  %2078 = vmatprep.subr.bf16.mxu0 (!%p1985_p9), %v2258_v0  ;;  %2196 = vmatprep.subr.bf16.mxu1 (!%p1985_p9), %v2258_v0  ;;  %599 = vst.msk [vmem:[#allocation3] sm:$0xff] (!%p1985_p9), %vm598_vm1, %v2417_v5  ;;  %600 = vst.msk [vmem:[#allocation3 + $0x8] sm:$0xff] (!%p1985_p9), %vm598_vm1, %v2417_v5  ;;  %v2418_v6 = vmov (!%p1985_p9), 0.0   ;;  %v1986_v28 = vld [vmem:[%s3162_s3] ss:$0 sm:$0xff] (!%p1985_p9) }
  0x16   : > { %s1978_s24 = sshll.u32 %s392_s23, 3  ;;  %s1981_s12 = sshll.u32 %s402_s10, 3  ;;  %601 = vst.msk [vmem:[#allocation3 + $0x10] sm:$0xff] (!%p1985_p9), %vm598_vm1, %v2417_v5  ;;  %602 = vst.msk [vmem:[#allocation3 + $0x18] sm:$0xff] (!%p1985_p9), %vm598_vm1, %v2417_v5  ;;  %2079 = vmatpush3.bf16.msra.mxu0 (!%p1985_p9), %v2258_v0  ;;  %2197 = vmatpush3.bf16.msra.mxu1 (!%p1985_p9), %v2258_v0 }
  0x17   : > { %s2522_s27 = scalar_lea.vmem %s3159_s0, %s1978_s24  ;;  %s2527_s30 = scalar_lea.vmem %s3168_s9, %s1978_s24  ;;  %603 = vst.msk [vmem:[#allocation3 + $0x20] sm:$0xff] (!%p1985_p9), %vm598_vm1, %v2417_v5  ;;  %604 = vst.msk [vmem:[#allocation3 + $0x28] sm:$0xff] (!%p1985_p9), %vm598_vm1, %v2417_v5 }
  0x18   : > { %s2532_s13 = scalar_lea.vmem %s3160_s1, %s1981_s12  ;;  %420 = sbr.rel (%p1985_p9) target bundleno = 258 (0x102), region = 60  ;;  %v2539_v1 = vld [vmem:[%s2522_s27] sm:$0xff] (!%p1985_p9)  ;;  %v2542_v2 = vld [vmem:[%s2522_s27 + $0x8] sm:$0xff] (!%p1985_p9)  ;;  %605 = vst.msk [vmem:[#allocation3 + $0x30] sm:$0xff] (!%p1985_p9), %vm598_vm1, %v2417_v5  ;;  %606 = vst.msk [vmem:[#allocation3 + $0x38] sm:$0xff] (!%p1985_p9), %vm598_vm1, %v2417_v5 }
  0x19   : > { %v2545_v3 = vld [vmem:[%s2522_s27 + $0x40] sm:$0xff] (!%p1985_p9)  ;;  %v437_v4 = vpack.c.bf16 (!%p1985_p9), %v2542_v2, %v2539_v1  ;;  %607 = vst.msk [vmem:[#allocation3 + $0x40] sm:$0xff] (!%p1985_p9), %vm598_vm1, %v2417_v5  ;;  %608 = vst.msk [vmem:[#allocation3 + $0x48] sm:$0xff] (!%p1985_p9), %vm598_vm1, %v2417_v5  ;;  %v430_v7 = vld [vmem:[%s2522_s27 + $0x48] sm:$0xff] (!%p1985_p9) }
  0x1a   : > { %609 = vst.msk [vmem:[#allocation3 + $0x50] sm:$0xff] (!%p1985_p9), %vm598_vm1, %v2417_v5  ;;  %610 = vst.msk [vmem:[#allocation3 + $0x58] sm:$0xff] (!%p1985_p9), %vm598_vm1, %v2417_v5  ;;  %v423_v8 = vld [vmem:[%s2522_s27 + $0x10] sm:$0xff] (!%p1985_p9)  ;;  %v424_v9 = vld [vmem:[%s2522_s27 + $0x18] sm:$0xff] (!%p1985_p9)  ;;  %v441_v10 = vpack.c.bf16 (!%p1985_p9), %v430_v7, %v2545_v3 }
  0x1b   : > { %611 = vst.msk [vmem:[#allocation3 + $0x60] sm:$0xff] (!%p1985_p9), %vm598_vm1, %v2417_v5  ;;  %612 = vst.msk [vmem:[#allocation3 + $0x68] sm:$0xff] (!%p1985_p9), %vm598_vm1, %v2417_v5  ;;  %v438_v11 = vpack.c.bf16 (!%p1985_p9), %v424_v9, %v423_v8  ;;  %v431_v12 = vld [vmem:[%s2522_s27 + $0x50] sm:$0xff] (!%p1985_p9)  ;;  %v432_v13 = vld [vmem:[%s2522_s27 + $0x58] sm:$0xff] (!%p1985_p9)  ;;  %2080 = vmatprep.mubr.msk.bf16.mxu0 (!%p1985_p9), %vm460_vm0, %v437_v4 }
  0x1c   : > { %613 = vst.msk [vmem:[#allocation3 + $0x70] sm:$0xff] (!%p1985_p9), %vm598_vm1, %v2417_v5  ;;  %614 = vst.msk [vmem:[#allocation3 + $0x78] sm:$0xff] (!%p1985_p9), %vm598_vm1, %v2417_v5  ;;  %v425_v14 = vld [vmem:[%s2522_s27 + $0x20] sm:$0xff] (!%p1985_p9)  ;;  %v442_v15 = vpack.c.bf16 (!%p1985_p9), %v432_v13, %v431_v12  ;;  %v426_v16 = vld [vmem:[%s2522_s27 + $0x28] sm:$0xff] (!%p1985_p9)  ;;  %2088 = vmatprep.mubr.msk.bf16.mxu1 (!%p1985_p9), %vm460_vm0, %v441_v10 }
  0x1d   : > { %615 = vst.msk [vmem:[#allocation4] sm:$0xff] (!%p1985_p9), %vm598_vm1, %v2418_v6  ;;  %616 = vst.msk [vmem:[#allocation4 + $0x8] sm:$0xff] (!%p1985_p9), %vm598_vm1, %v2418_v6  ;;  %v433_v17 = vld [vmem:[%s2522_s27 + $0x60] sm:$0xff] (!%p1985_p9)  ;;  %v434_v18 = vld [vmem:[%s2522_s27 + $0x68] sm:$0xff] (!%p1985_p9)  ;;  %v439_v19 = vpack.c.bf16 (!%p1985_p9), %v426_v16, %v425_v14  ;;  %2081 = vmatmul.mubr.msk.bf16.vlgmr.msra.gmra.mrb[0].mxu0 (!%p1985_p9), %vm460_vm0, %v438_v11 }
  0x1e   : > { %617 = vst.msk [vmem:[#allocation4 + $0x10] sm:$0xff] (!%p1985_p9), %vm598_vm1, %v2418_v6  ;;  %618 = vst.msk [vmem:[#allocation4 + $0x18] sm:$0xff] (!%p1985_p9), %vm598_vm1, %v2418_v6  ;;  %v443_v20 = vpack.c.bf16 (!%p1985_p9), %v434_v18, %v433_v17  ;;  %2089 = vmatmul.mubr.msk.bf16.vlgmr.msra.gmra.mrb[0].mxu1 (!%p1985_p9), %vm460_vm0, %v442_v15  ;;  %v427_v21 = vld [vmem:[%s2522_s27 + $0x30] sm:$0xff] (!%p1985_p9)  ;;  %v428_v22 = vld [vmem:[%s2522_s27 + $0x38] sm:$0xff] (!%p1985_p9) }
  0x1f   : > { %619 = vst.msk [vmem:[#allocation4 + $0x20] sm:$0xff] %vm598_vm1, %v2418_v6  ;;  %620 = vst.msk [vmem:[#allocation4 + $0x28] sm:$0xff] %vm598_vm1, %v2418_v6  ;;  %2084 = vmatprep.mubr.msk.bf16.mxu0 %vm460_vm0, %v439_v19  ;;  %v435_v23 = vld [vmem:[%s2522_s27 + $0x70] sm:$0xff]  ;;  %v436_v24 = vld [vmem:[%s2522_s27 + $0x78] sm:$0xff]  ;;  %v440_v25 = vpack.c.bf16 %v428_v22, %v427_v21 }
  0x20   : > { %621 = vst.msk [vmem:[#allocation4 + $0x30] sm:$0xff] %vm598_vm1, %v2418_v6  ;;  %622 = vst.msk [vmem:[#allocation4 + $0x38] sm:$0xff] %vm598_vm1, %v2418_v6  ;;  %2092 = vmatprep.mubr.msk.bf16.mxu1 %vm460_vm0, %v443_v20  ;;  %v444_v26 = vpack.c.bf16 %v436_v24, %v435_v23 }
  0x21   : > { %623 = vst.msk [vmem:[#allocation4 + $0x40] sm:$0xff] %vm598_vm1, %v2418_v6  ;;  %624 = vst.msk [vmem:[#allocation4 + $0x48] sm:$0xff] %vm598_vm1, %v2418_v6 }
  0x22   : > { %625 = vst.msk [vmem:[#allocation4 + $0x50] sm:$0xff] %vm598_vm1, %v2418_v6  ;;  %626 = vst.msk [vmem:[#allocation4 + $0x58] sm:$0xff] %vm598_vm1, %v2418_v6 }
  0x23   : > { %627 = vst.msk [vmem:[#allocation4 + $0x60] sm:$0xff] %vm598_vm1, %v2418_v6  ;;  %628 = vst.msk [vmem:[#allocation4 + $0x68] sm:$0xff] %vm598_vm1, %v2418_v6 }
  0x24   : > { %629 = vst.msk [vmem:[#allocation4 + $0x70] sm:$0xff] %vm598_vm1, %v2418_v6  ;;  %630 = vst.msk [vmem:[#allocation4 + $0x78] sm:$0xff] %vm598_vm1, %v2418_v6 }
  0x25   : > { %631 = vst.msk [vmem:[#allocation5] sm:$0xff] %vm460_vm0, %v2418_v6  ;;  %632 = vst.msk [vmem:[#allocation5 + $0x8] sm:$0xff] %vm460_vm0, %v2418_v6  ;;  %2085 = vmatmul.mubr.msk.bf16.gmra.mrb[4].mxu0 %vm460_vm0, %v440_v25 }
  0x26   : > { %633 = vst.msk [vmem:[#allocation5 + $0x10] sm:$0xff] %vm460_vm0, %v2418_v6  ;;  %634 = vst.msk [vmem:[#allocation5 + $0x18] sm:$0xff] %vm460_vm0, %v2418_v6  ;;  %2093 = vmatmul.mubr.msk.bf16.gmra.mrb[4].mxu1 %vm460_vm0, %v444_v26 }
  0x27   : > { %635 = vst.msk [vmem:[#allocation5 + $0x20] sm:$0xff] %vm460_vm0, %v2418_v6  ;;  %636 = vst.msk [vmem:[#allocation5 + $0x28] sm:$0xff] %vm460_vm0, %v2418_v6 }
  0x28   : > { %637 = vst.msk [vmem:[#allocation5 + $0x30] sm:$0xff] %vm460_vm0, %v2418_v6  ;;  %638 = vst.msk [vmem:[#allocation5 + $0x38] sm:$0xff] %vm460_vm0, %v2418_v6 }
  0x29   : > { %639 = vst.msk [vmem:[#allocation5 + $0x40] sm:$0xff] %vm460_vm0, %v2418_v6  ;;  %640 = vst.msk [vmem:[#allocation5 + $0x48] sm:$0xff] %vm460_vm0, %v2418_v6 }
  0x2a   : > { %641 = vst.msk [vmem:[#allocation5 + $0x50] sm:$0xff] %vm460_vm0, %v2418_v6  ;;  %642 = vst.msk [vmem:[#allocation5 + $0x58] sm:$0xff] %vm460_vm0, %v2418_v6 }
  0x2b   : > { %643 = vst.msk [vmem:[#allocation5 + $0x60] sm:$0xff] %vm460_vm0, %v2418_v6  ;;  %644 = vst.msk [vmem:[#allocation5 + $0x68] sm:$0xff] %vm460_vm0, %v2418_v6 }
  0x2c   : > { %645 = vst.msk [vmem:[#allocation5 + $0x70] sm:$0xff] %vm460_vm0, %v2418_v6  ;;  %646 = vst.msk [vmem:[#allocation5 + $0x78] sm:$0xff] %vm460_vm0, %v2418_v6 }
  0xf0   : > { %v2082_v27 = vpop.f32.mrb[0].mxu0 }
  0xf1   : > { %v2090_v29 = vpop.f32.mrb[0].mxu1  ;;  %v519_v30 = vpop.f32.mrb[1].mxu0  ;;  %v528_v34 = vadd.f32 %v2082_v27, %v1986_v28 }
  0xf2   : > { %v551_v31 = vpop.f32.mrb[1].mxu1  ;;  %v2083_v32 = vpop.f32.mrb[2].mxu0  ;;  %v560_v35 = vadd.f32 %v2090_v29, %v1986_v28  ;;  %v520_v40 = vadd.f32 %v1986_v28, %v519_v30 }
  0xf3   : > { %v2091_v33 = vpop.f32.mrb[2].mxu1  ;;  %v531_v36 = vadd.f32 %v2083_v32, %v1986_v28  ;;  %v522_v38 = vpop.f32.mrb[3].mxu0  ;;  %v552_v41 = vadd.f32 %v1986_v28, %v551_v31 }
  0xf4   : > { %v563_v37 = vadd.f32 %v2091_v33, %v1986_v28  ;;  %v554_v39 = vpop.f32.mrb[3].mxu1  ;;  %v523_v42 = vadd.f32 %v1986_v28, %v522_v38 }
  0xf5   : > { %v555_v43 = vadd.f32 %v1986_v28, %v554_v39  ;;  %v583_v44 = vpack.c.bf16 %v531_v36, %v528_v34 }
  0xf6   : > { %v587_v45 = vpack.c.bf16 %v563_v37, %v560_v35  ;;  %v582_v46 = vpack.c.bf16 %v523_v42, %v520_v40 }
  0xf7   : > { %v586_v47 = vpack.c.bf16 %v555_v43, %v552_v41  ;;  %591 = vst [vmem:[#allocation2 + $0x8] sm:$0xff] %v583_v44 }
  0xf8   : > { %595 = vst [vmem:[#allocation2 + $0x28] sm:$0xff] %v587_v45  ;;  %590 = vst [vmem:[#allocation2] sm:$0xff] %v582_v46  ;;  %v2086_v48 = vpop.f32.mrb[4].mxu0 }
  0xf9   : > { %594 = vst [vmem:[#allocation2 + $0x20] sm:$0xff] %v586_v47  ;;  %v2094_v49 = vpop.f32.mrb[4].mxu1  ;;  %v535_v50 = vpop.f32.mrb[5].mxu0  ;;  %v544_v54 = vadd.f32 %v2086_v48, %v1986_v28 }
  0xfa   : > { %v567_v51 = vpop.f32.mrb[5].mxu1  ;;  %v2087_v52 = vpop.f32.mrb[6].mxu0  ;;  %v576_v55 = vadd.f32 %v2094_v49, %v1986_v28  ;;  %v536_v60 = vadd.f32 %v1986_v28, %v535_v50 }
  0xfb   : > { %v2095_v53 = vpop.f32.mrb[6].mxu1  ;;  %v547_v56 = vadd.f32 %v2087_v52, %v1986_v28  ;;  %v538_v58 = vpop.f32.mrb[7].mxu0  ;;  %v568_v61 = vadd.f32 %v1986_v28, %v567_v51 }
  0xfc   : > { %v579_v57 = vadd.f32 %v2095_v53, %v1986_v28  ;;  %v570_v59 = vpop.f32.mrb[7].mxu1  ;;  %v539_v62 = vadd.f32 %v1986_v28, %v538_v58 }
  0xfd   : > { %v571_v63 = vadd.f32 %v1986_v28, %v570_v59  ;;  %v585_v0 = vpack.c.bf16 %v547_v56, %v544_v54 }
  0xfe   : > { %v589_v1 = vpack.c.bf16 %v579_v57, %v576_v55  ;;  %v584_v2 = vpack.c.bf16 %v539_v62, %v536_v60 }
  0xff   : > { %v588_v3 = vpack.c.bf16 %v571_v63, %v568_v61  ;;  %593 = vst [vmem:[#allocation2 + $0x18] sm:$0xff] %v585_v0 }
 0x100   : > { %597 = vst [vmem:[#allocation2 + $0x38] sm:$0xff] %v589_v1  ;;  %592 = vst [vmem:[#allocation2 + $0x10] sm:$0xff] %v584_v2 }
 0x101   : > { %596 = vst [vmem:[#allocation2 + $0x30] sm:$0xff] %v588_v3 }
 0x102 PF: > { %v2261_v4 = vld [vmem:[%s3163_s4] sm:$0xff]   ;;  %v648_v6 = vld [vmem:[%s2532_s13 + $0x8] sm:$0xff]  ;;  %vm686_vm2 = vcmask 130048   ;;  %v649_v7 = vld [vmem:[%s2532_s13 + $0x10] sm:$0xff]  ;;  %vm1361_vm3 = vcmask 7168   ;;  %p2016_p10 = scmp.ne.s32.totalorder %s2391_s11, 1 }
 0x103   : > { %v647_v5 = vld [vmem:[%s2532_s13] sm:$0xff]  ;;  %2096 = vmatprep.subr.bf16.mxu0 %v2261_v4  ;;  %v650_v9 = vld [vmem:[%s2532_s13 + $0x18] sm:$0xff]  ;;  %v652_v11 = vld [vmem:[%s2532_s13 + $0x28] sm:$0xff]  ;;  %s1679_s11 = sld [smem:[#allocation6]] (!%p2016_p10) }
 0x104   : > { %v663_v8 = vpack.c.bf16 %v648_v6, %v647_v5  ;;  %v651_v10 = vld [vmem:[%s2532_s13 + $0x20] sm:$0xff]  ;;  %2097 = vmatpush3.bf16.msra.mxu0 %v2261_v4  ;;  %v2631_v12 = vpack.c.bf16 %v650_v9, %v649_v7  ;;  %v653_v14 = vld [vmem:[%s2532_s13 + $0x30] sm:$0xff]  ;;  %v654_v15 = vld [vmem:[%s2532_s13 + $0x38] sm:$0xff] }
 0x105   : > { %v2633_v13 = vpack.c.bf16 %v652_v11, %v651_v10  ;;  %v655_v16 = vld [vmem:[%s2532_s13 + $0x40] sm:$0xff]  ;;  %v656_v17 = vld [vmem:[%s2532_s13 + $0x48] sm:$0xff]  ;;  %v2645_v18 = vpack.c.bf16 %v654_v15, %v653_v14  ;;  %v657_v20 = vld [vmem:[%s2532_s13 + $0x50] sm:$0xff] }
 0x106   : > { %2098 = vmatprep.mubr.msk.bf16.mxu0 %vm686_vm2, %v663_v8  ;;  %2116 = vmatprep.mubr.msk.bf16.mxu1 %vm686_vm2, %v663_v8  ;;  %v2647_v19 = vpack.c.bf16 %v656_v17, %v655_v16  ;;  %v658_v21 = vld [vmem:[%s2532_s13 + $0x58] sm:$0xff]  ;;  %v659_v22 = vld [vmem:[%s2532_s13 + $0x60] sm:$0xff]  ;;  %v660_v23 = vld [vmem:[%s2532_s13 + $0x68] sm:$0xff] }
 0x107   : > { %2099 = vmatmul.mubr.msk.bf16.vlgmr.msra.gmra.mrb[0].mxu0 %vm686_vm2, %v2631_v12  ;;  %v2657_v24 = vpack.c.bf16 %v658_v21, %v657_v20  ;;  %v2659_v25 = vpack.c.bf16 %v660_v23, %v659_v22  ;;  %v661_v26 = vld [vmem:[%s2532_s13 + $0x70] sm:$0xff]  ;;  %v662_v27 = vld [vmem:[%s2532_s13 + $0x78] sm:$0xff]  ;;  %v936_v29 = vld [vmem:[#allocation2] sm:$0xff] }
 0x108   : > { %2102 = vmatprep.mubr.msk.bf16.mxu0 %vm686_vm2, %v2633_v13  ;;  %v2667_v28 = vpack.c.bf16 %v662_v27, %v661_v26  ;;  %v1996_v31 = vld [vmem:[%s3164_s5] ss:$0 sm:$0xff]  ;;  %v937_v7 = vld [vmem:[#allocation2 + $0x8] sm:$0xff]  ;;  %v938_v8 = vld [vmem:[#allocation2 + $0x10] sm:$0xff] }
 0x109   : > { %v939_v9 = vld [vmem:[#allocation2 + $0x18] sm:$0xff]  ;;  %v940_v10 = vld [vmem:[#allocation2 + $0x20] sm:$0xff]  ;;  %v941_v11 = vld [vmem:[#allocation2 + $0x28] sm:$0xff] }
 0x10a   : > { %v942_v14 = vld [vmem:[#allocation2 + $0x30] sm:$0xff]  ;;  %v943_v15 = vld [vmem:[#allocation2 + $0x38] sm:$0xff]  ;;  %v2262_v16 = vld [vmem:[%s3165_s6] sm:$0xff]  }
 0x10b   : > { %2114 = vmatprep.subr.bf16.mxu1 %v2262_v16 }
 0x10c   : > { %2115 = vmatpush3.bf16.msra.mxu1 %v2262_v16 }
 0x10f   : > { %2103 = vmatmul.mubr.msk.bf16.gmra.mrb[4].mxu0 %vm686_vm2, %v2645_v18  ;;  %2117 = vmatmul.mubr.msk.bf16.vlgmr.msra.gmra.mrb[0].mxu1 %vm686_vm2, %v2631_v12 }
 0x110   : > { %2106 = vmatprep.mubr.msk.bf16.mxu0 %vm686_vm2, %v2647_v19  ;;  %2120 = vmatprep.mubr.msk.bf16.mxu1 %vm686_vm2, %v2633_v13 }
 0x117   : > { %2107 = vmatmul.mubr.msk.bf16.gmra.mrb[8].mxu0 %vm686_vm2, %v2657_v24  ;;  %2121 = vmatmul.mubr.msk.bf16.gmra.mrb[4].mxu1 %vm686_vm2, %v2645_v18 }
 0x118   : > { %2110 = vmatprep.mubr.msk.bf16.mxu0 %vm686_vm2, %v2659_v25  ;;  %2124 = vmatprep.mubr.msk.bf16.mxu1 %vm686_vm2, %v2647_v19 }
 0x11f   : > { %2111 = vmatmul.mubr.msk.bf16.gmra.mrb[12].mxu0 %vm686_vm2, %v2667_v28  ;;  %2125 = vmatmul.mubr.msk.bf16.gmra.mrb[8].mxu1 %vm686_vm2, %v2657_v24  ;;  %v2419_v24 = vmov 0  }
 0x120   : > { %2148 = vmatprep.mubr.bf16.mxu0 %v936_v29  ;;  %2128 = vmatprep.mubr.msk.bf16.mxu1 %vm686_vm2, %v2659_v25 }
 0x121   : > { %2260 = vset.pattern.permute.xlu1 %v2419_v24  ;;  %2259 = vset.pattern.permute.xlu0 %v2419_v24  ;;  %v2798_v24 = vld [vmem:[#allocation3 + $0x30] sm:$0xff] }
 0x127   : > { %2129 = vmatmul.mubr.msk.bf16.gmra.mrb[12].mxu1 %vm686_vm2, %v2667_v28 }
 0x1da   : > { %v2100_v30 = vpop.f32.mrb[0].mxu0 }
 0x1db   : > { %v745_v32 = vpop.f32.mrb[1].mxu0  ;;  %v754_v34 = vadd.f32 %v2100_v30, %v1996_v31 }
 0x1dc   : > { %v2101_v33 = vpop.f32.mrb[2].mxu0  ;;  %v746_v37 = vadd.f32 %v1996_v31, %v745_v32  ;;  %v2742_v32 = vld [vmem:[%s3166_s7] ss:$0 sm:$0xff] }
 0x1dd   : > { %v757_v35 = vadd.f32 %v2101_v33, %v1996_v31  ;;  %v748_v36 = vpop.f32.mrb[3].mxu0 }
 0x1de   : > { %v749_v38 = vadd.f32 %v1996_v31, %v748_v36 }
 0x1df   : > { %v809_v39 = vpack.c.bf16 %v757_v35, %v754_v34 }
 0x1e0   : > { %v808_v40 = vpack.c.bf16 %v749_v38, %v746_v37 }
 0x1e2   : > { %2132 = vmatprep.subr.bf16.mxu0 %v808_v40  ;;  %v2104_v41 = vpop.f32.mrb[4].mxu0  ;;  %v2118_v33 = vpop.f32.mrb[0].mxu1 }
 0x1e3   : > { %2133 = vmatpush3.bf16.xpose.msra.mxu0 %v808_v40  ;;  %v770_v42 = vadd.f32 %v2104_v41, %v1996_v31  ;;  %v761_v43 = vpop.f32.mrb[5].mxu0  ;;  %v874_v34 = vadd.f32 %v2118_v33, %v2742_v32  ;;  %v865_v35 = vpop.f32.mrb[1].mxu1 }
 0x1e4   : > { %2134 = vmatprep.subr.bf16.mxu0 %v809_v39  ;;  %v762_v44 = vadd.f32 %v1996_v31, %v761_v43  ;;  %v2105_v45 = vpop.f32.mrb[6].mxu0  ;;  %v866_v36 = vadd.f32 %v2742_v32, %v865_v35  ;;  %v2119_v37 = vpop.f32.mrb[2].mxu1  ;;  %v2802_v35 = vld [vmem:[#allocation3 + $0x28] sm:$0xff] }
 0x1e5   : > { %v773_v46 = vadd.f32 %v2105_v45, %v1996_v31  ;;  %v764_v47 = vpop.f32.mrb[7].mxu0  ;;  %v877_v38 = vadd.f32 %v2119_v37, %v2742_v32 }
 0x1e6   : > { %v765_v48 = vadd.f32 %v1996_v31, %v764_v47 }
 0x1e7   : > { %v811_v49 = vpack.c.bf16 %v773_v46, %v770_v42  ;;  %v929_v41 = vpack.c.bf16 %v877_v38, %v874_v34 }
 0x1e8   : > { %v810_v50 = vpack.c.bf16 %v765_v48, %v762_v44 }
 0x1ea   : > { %v2108_v51 = vpop.f32.mrb[8].mxu0 }
 0x1eb   : > { %2135 = vmatpush3.bf16.xpose.msra.mxu0 %v809_v39  ;;  %v786_v52 = vadd.f32 %v2108_v51, %v1996_v31  ;;  %v777_v53 = vpop.f32.mrb[9].mxu0  ;;  %v868_v39 = vpop.f32.mrb[3].mxu1 }
 0x1ec   : > { %2136 = vmatprep.subr.bf16.mxu0 %v810_v50  ;;  %v778_v54 = vadd.f32 %v1996_v31, %v777_v53  ;;  %v2109_v55 = vpop.f32.mrb[10].mxu0  ;;  %v869_v40 = vadd.f32 %v2742_v32, %v868_v39  ;;  %v2122_v43 = vpop.f32.mrb[4].mxu1  ;;  %v2752_v53 = vld [vmem:[#allocation3 + $0x10] sm:$0xff] }
 0x1ed   : > { %v789_v56 = vadd.f32 %v2109_v55, %v1996_v31  ;;  %v780_v57 = vpop.f32.mrb[11].mxu0  ;;  %v890_v44 = vadd.f32 %v2122_v43, %v2742_v32  ;;  %v881_v45 = vpop.f32.mrb[5].mxu1 }
 0x1ee   : > { %v781_v58 = vadd.f32 %v1996_v31, %v780_v57  ;;  %v928_v42 = vpack.c.bf16 %v869_v40, %v866_v36  ;;  %v882_v46 = vadd.f32 %v2742_v32, %v881_v45  ;;  %v2123_v47 = vpop.f32.mrb[6].mxu1 }
 0x1ef   : > { %v813_v59 = vpack.c.bf16 %v789_v56, %v786_v52  ;;  %v893_v48 = vadd.f32 %v2123_v47, %v2742_v32 }
 0x1f0   : > { %v812_v60 = vpack.c.bf16 %v781_v58, %v778_v54  ;;  %2164 = vmatprep.subr.bf16.mxu1 %v928_v42  ;;  %v2754_v54 = vld [vmem:[#allocation3] sm:$0xff] }
 0x1f1   : > { %2165 = vmatpush3.bf16.msra.mxu1 %v928_v42  ;;  %v931_v51 = vpack.c.bf16 %v893_v48, %v890_v44  ;;  %v2812_v42 = vld [vmem:[#allocation3 + $0x40] sm:$0xff] }
 0x1f2   : > { %v2112_v61 = vpop.f32.mrb[12].mxu0  ;;  %2166 = vmatprep.subr.bf16.mxu1 %v929_v41 }
 0x1f3   : > { %2137 = vmatpush3.bf16.xpose.msra.mxu0 %v810_v50  ;;  %v802_v62 = vadd.f32 %v2112_v61, %v1996_v31  ;;  %v793_v63 = vpop.f32.mrb[13].mxu0 }
 0x1f4   : > { %2138 = vmatprep.subr.bf16.mxu0 %v811_v49  ;;  %v794_v0 = vadd.f32 %v1996_v31, %v793_v63  ;;  %v2113_v1 = vpop.f32.mrb[14].mxu0 }
 0x1f5   : > { %v805_v2 = vadd.f32 %v2113_v1, %v1996_v31  ;;  %v796_v3 = vpop.f32.mrb[15].mxu0  ;;  %2167 = vmatpush3.bf16.msra.mxu1 %v929_v41 }
 0x1f6   : > { %v797_v4 = vadd.f32 %v1996_v31, %v796_v3  ;;  %v2781_v3 = vld [vmem:[#allocation3 + $0x20] sm:$0xff] }
 0x1f7   : > { %v815_v5 = vpack.c.bf16 %v805_v2, %v802_v62 }
 0x1f8   : > { %v814_v6 = vpack.c.bf16 %v797_v4, %v794_v0 }
 0x1fb   : > { %2139 = vmatpush3.bf16.xpose.msra.mxu0 %v811_v49  ;;  %v884_v49 = vpop.f32.mrb[7].mxu1 }
 0x1fc   : > { %2140 = vmatprep.subr.bf16.mxu0 %v812_v60  ;;  %v885_v50 = vadd.f32 %v2742_v32, %v884_v49  ;;  %v2126_v0 = vpop.f32.mrb[8].mxu1 }
 0x1fd   : > { %v897_v2 = vpop.f32.mrb[9].mxu1 }
 0x1fe   : > { %v930_v52 = vpack.c.bf16 %v885_v50, %v882_v46  ;;  %v2127_v4 = vpop.f32.mrb[10].mxu1  ;;  %v2819_v46 = vld [vmem:[#allocation3 + $0x58] sm:$0xff] }
 0x200   : > { %2168 = vmatprep.subr.bf16.mxu1 %v930_v52 }
 0x201   : > { %2169 = vmatpush3.bf16.msra.mxu1 %v930_v52 }
 0x202   : > { %2170 = vmatprep.subr.bf16.mxu1 %v931_v51 }
 0x203   : > { %2141 = vmatpush3.bf16.xpose.msra.mxu0 %v812_v60  ;;  %v2767_v60 = vld [vmem:[#allocation3 + $0x8] sm:$0xff] }
 0x204   : > { %2142 = vmatprep.subr.bf16.mxu0 %v813_v59 }
 0x205   : > { %2171 = vmatpush3.bf16.msra.mxu1 %v931_v51 }
 0x20b   : > { %2143 = vmatpush3.bf16.xpose.msra.mxu0 %v813_v59  ;;  %v2762_v59 = vld [vmem:[#allocation3 + $0x18] sm:$0xff] }
 0x20c   : > { %2144 = vmatprep.subr.bf16.mxu0 %v814_v6 }
 0x213   : > { %2145 = vmatpush3.bf16.xpose.msra.mxu0 %v814_v6  ;;  %v906_v6 = vadd.f32 %v2126_v0, %v2742_v32  ;;  %v2836_v0 = vld [vmem:[#allocation3 + $0x48] sm:$0xff] }
 0x214   : > { %2146 = vmatprep.subr.bf16.mxu0 %v815_v5 }
 0x21b   : > { %2147 = vmatpush3.bf16.xpose.msra.mxu0 %v815_v5  ;;  %v2785_v5 = vld [vmem:[#allocation3 + $0x38] sm:$0xff] }
 0x222   : > { %2149 = vmatmul.mubr.bf16.vlgmr.msra.gmra.mrb[16].mxu0 %v937_v7  ;;  %v898_v7 = vadd.f32 %v2742_v32, %v897_v2 }
 0x223   : > { %2152 = vmatprep.mubr.bf16.mxu0 %v938_v8  ;;  %v900_v8 = vpop.f32.mrb[11].mxu1 }
 0x224   : > { %v2130_v37 = vpop.f32.mrb[12].mxu1 }
 0x225   : > { %v913_v40 = vpop.f32.mrb[13].mxu1  ;;  %v922_v43 = vadd.f32 %v2130_v37, %v2742_v32 }
 0x226   : > { %v914_v44 = vadd.f32 %v2742_v32, %v913_v40  ;;  %v2131_v45 = vpop.f32.mrb[14].mxu1 }
 0x227   : > { %v925_v47 = vadd.f32 %v2131_v45, %v2742_v32  ;;  %v916_v48 = vpop.f32.mrb[15].mxu1 }
 0x228   : > { %v917_v50 = vadd.f32 %v2742_v32, %v916_v48 }
 0x22a   : > { %2153 = vmatmul.mubr.bf16.gmra.mrb[20].mxu0 %v939_v9 }
 0x22b   : > { %2156 = vmatprep.mubr.bf16.mxu0 %v940_v10  ;;  %v909_v10 = vadd.f32 %v2127_v4, %v2742_v32 }
 0x22d   : > { %v933_v33 = vpack.c.bf16 %v909_v10, %v906_v6 }
 0x232   : > { %2157 = vmatmul.mubr.bf16.gmra.mrb[24].mxu0 %v941_v11  ;;  %v901_v11 = vadd.f32 %v2742_v32, %v900_v8  ;;  %v2848_v8 = vld [vmem:[#allocation3 + $0x60] sm:$0xff] }
 0x233   : > { %2160 = vmatprep.mubr.bf16.mxu0 %v942_v14 }
 0x234   : > { %v932_v34 = vpack.c.bf16 %v901_v11, %v898_v7 }
 0x236   : > { %2172 = vmatprep.subr.bf16.mxu1 %v932_v34 }
 0x237   : > { %2173 = vmatpush3.bf16.msra.mxu1 %v932_v34  ;;  %v2866_v34 = vld [vmem:[#allocation3 + $0x70] sm:$0xff] }
 0x238   : > { %2174 = vmatprep.subr.bf16.mxu1 %v933_v33 }
 0x23a   : > { %2161 = vmatmul.mubr.bf16.gmra.mrb[28].mxu0 %v943_v15 }
 0x23b   : > { %2175 = vmatpush3.bf16.msra.mxu1 %v933_v33 }
 0x2f5   : > { %v2691_v17 = vpop.f32.mrb[16].mxu0 }
 0x2f6   : > { %1061 = vmax.xlane.f32.xlu1 %v2691_v17  ;;  %v2694_v12 = vpop.f32.mrb[17].mxu0 }
 0x2f7   : > { %1057 = vmax.xlane.f32.xlu0 %v2694_v12  ;;  %v2697_v13 = vpop.f32.mrb[18].mxu0 }
 0x2f8   : > { %v2699_v18 = vpop.f32.mrb[19].mxu0 }
 0x2fa   : > { %1063 = vmax.xlane.f32.xlu1 %v2697_v13 }
 0x2fb   : > { %1059 = vmax.xlane.f32.xlu0 %v2699_v18 }
 0x2fd   : > { %v2703_v19 = vpop.f32.mrb[20].mxu0 }
 0x2fe   : > { %v2705_v20 = vpop.f32.mrb[21].mxu0 }
 0x2ff   : > { %1065 = vmax.xlane.f32.xlu0 %v2705_v20  ;;  %v2708_v21 = vpop.f32.mrb[22].mxu0 }
 0x300   : > { %1071 = vmax.xlane.f32.xlu1 %v2708_v21  ;;  %v2711_v22 = vpop.f32.mrb[23].mxu0 }
 0x303   : > { %1069 = vmax.xlane.f32.xlu0 %v2703_v19 }
 0x304   : > { %1067 = vmax.xlane.f32.xlu1 %v2711_v22 }
 0x305   : > { %v2715_v23 = vpop.f32.mrb[24].mxu0 }
 0x306   : > { %v2717_v25 = vpop.f32.mrb[25].mxu0 }
 0x307   : > { %v2719_v26 = vpop.f32.mrb[26].mxu0  ;;  %1073 = vmax.xlane.f32.xlu0 %v2717_v25 }
 0x308   : > { %1079 = vmax.xlane.f32.xlu1 %v2719_v26  ;;  %v2723_v27 = vpop.f32.mrb[27].mxu0 }
 0x30b   : > { %1077 = vmax.xlane.f32.xlu0 %v2715_v23 }
 0x30c   : > { %1075 = vmax.xlane.f32.xlu1 %v2723_v27 }
 0x30d   : > { %v2727_v28 = vpop.f32.mrb[28].mxu0 }
 0x30e   : > { %v2729_v29 = vpop.f32.mrb[29].mxu0 }
 0x30f   : > { %v2731_v30 = vpop.f32.mrb[30].mxu0  ;;  %1081 = vmax.xlane.f32.xlu0 %v2729_v29 }
 0x310   : > { %1087 = vmax.xlane.f32.xlu1 %v2731_v30  ;;  %v2735_v31 = vpop.f32.mrb[31].mxu0 }
 0x313   : > { %1085 = vmax.xlane.f32.xlu0 %v2727_v28 }
 0x314   : > { %1083 = vmax.xlane.f32.xlu1 %v2735_v31 }
 0x383   : > { %v1062_v55 = vpop.xlane.xlu1 %1061 }
 0x384   : > { %v2757_v56 = vmax.f32 %v2752_v53, %v1062_v55  ;;  %v1058_v57 = vpop.xlane.xlu0 %1057  ;;  %v935_v55 = vpack.c.bf16 %v925_v47, %v922_v43 }
 0x385   : > { %v2760_v58 = vmax.f32 %v2754_v54, %v1058_v57 }
 0x386   : > { %1629 = vst.msk [vmem:[#allocation3 + $0x10] sm:$0xff] %vm1361_vm3, %v2757_v56  ;;  %1165 = vperm.xlu1 %2260, %v2757_v56  }
 0x387   : > { %1627 = vst.msk [vmem:[#allocation3] sm:$0xff] %vm1361_vm3, %v2760_v58  ;;  %v1064_v61 = vpop.xlane.xlu1 %1063  ;;  %1155 = vperm.xlu0 %2259, %v2760_v58   ;;  %v1105_v2 = vsub.f32 %v2754_v54, %v2760_v58 }
 0x388   : > { %v2773_v62 = vmax.f32 %v2762_v59, %v1064_v61  ;;  %v1060_v63 = vpop.xlane.xlu0 %1059  ;;  %v2831_v61 = vld [vmem:[#allocation3 + $0x50] sm:$0xff] }
 0x389   : > { %v2776_v1 = vmax.f32 %v2767_v60, %v1060_v63  ;;  %v934_v63 = vpack.c.bf16 %v917_v50, %v914_v44  ;;  %v1121_v58 = vmul.f32 1.442695, %v1105_v2 }
 0x38a   : > { %1630 = vst.msk [vmem:[#allocation3 + $0x18] sm:$0xff] %vm1361_vm3, %v2773_v62  ;;  %1170 = vperm.xlu1 %2260, %v2773_v62   ;;  %v1108_v10 = vsub.f32 %v2762_v59, %v2773_v62 }
 0x38b   : > { %1628 = vst.msk [vmem:[#allocation3 + $0x8] sm:$0xff] %vm1361_vm3, %v2776_v1  ;;  %2176 = vmatprep.subr.bf16.mxu1 %v934_v63  ;;  %v1106_v37 = vsub.f32 %v2767_v60, %v2776_v1  ;;  %2263 = vpow2.f32 %v1121_v58 }
 0x38c   : > { %v1066_v9 = vpop.xlane.xlu0 %1065  ;;  %2177 = vmatpush3.bf16.msra.mxu1 %v934_v63 }
 0x38d   : > { %v2792_v14 = vmax.f32 %v2781_v3, %v1066_v9  ;;  %v1072_v15 = vpop.xlane.xlu1 %1071  ;;  %2178 = vmatprep.subr.bf16.mxu1 %v935_v55  ;;  %v2853_v9 = vld [vmem:[#allocation3 + $0x78] sm:$0xff]  ;;  %v1123_v47 = vmul.f32 1.442695, %v1106_v37 }
 0x38e   : > { %v2795_v16 = vmax.f32 %v2785_v5, %v1072_v15  ;;  %1160 = vperm.xlu1 %2260, %v2776_v1   ;;  %v1107_v1 = vsub.f32 %v2752_v53, %v2757_v56 }
 0x38f   : > { %1631 = vst.msk [vmem:[#allocation3 + $0x20] sm:$0xff] %vm1361_vm3, %v2792_v14 }
 0x390   : > { %1634 = vst.msk [vmem:[#allocation3 + $0x38] sm:$0xff] %vm1361_vm3, %v2795_v16  ;;  %v1070_v36 = vpop.xlane.xlu0 %1069  ;;  %2179 = vmatpush3.bf16.msra.mxu1 %v935_v55  ;;  %v1125_v48 = vmul.f32 1.442695, %v1107_v1 }
 0x391   : > { %v2807_v38 = vmax.f32 %v2798_v24, %v1070_v36  ;;  %v1068_v39 = vpop.xlane.xlu1 %1067  ;;  %v1054_v36 = vld [vmem:[#allocation3 + $0x68] sm:$0xff] }
 0x392   : > { %v2810_v41 = vmax.f32 %v2802_v35, %v1068_v39  ;;  %v1127_v39 = vmul.f32 1.442695, %v1108_v10 }
 0x393   : > { %1633 = vst.msk [vmem:[#allocation3 + $0x30] sm:$0xff] %vm1361_vm3, %v2807_v38  ;;  %1185 = vperm.xlu1 %2260, %v2807_v38  }
 0x394   : > { %1632 = vst.msk [vmem:[#allocation3 + $0x28] sm:$0xff] %vm1361_vm3, %v2810_v41  ;;  %v1074_v49 = vpop.xlane.xlu0 %1073  ;;  %v1110_v40 = vsub.f32 %v2802_v35, %v2810_v41  ;;  %2265 = vpow2.f32 %v1127_v39  ;;  %v1112_v35 = vsub.f32 %v2785_v5, %v2795_v16 }
 0x395   : > { %v1080_v51 = vpop.xlane.xlu1 %1079  ;;  %v2826_v52 = vmax.f32 %v2812_v42, %v1074_v49  ;;  %2267 = vpow2.f32 %v1123_v47  ;;  %v1109_v49 = vsub.f32 %v2781_v3, %v2792_v14  ;;  %v2899_v56 = vpop.eup %2263 }
 0x396   : > { %v2829_v57 = vmax.f32 %v2819_v46, %v1080_v51  ;;  %v1135_v50 = vmul.f32 1.442695, %v1112_v35 }
 0x397   : > { %1635 = vst.msk [vmem:[#allocation3 + $0x40] sm:$0xff] %vm1361_vm3, %v2826_v52  ;;  %1175 = vperm.xlu1 %2260, %v2792_v14   ;;  %v1129_v5 = vmul.f32 1.442695, %v1109_v49 }
 0x398   : > { %1638 = vst.msk [vmem:[#allocation3 + $0x58] sm:$0xff] %vm1361_vm3, %v2829_v57  ;;  %v1078_v32 = vpop.xlane.xlu0 %1077  ;;  %v1116_v53 = vsub.f32 %v2819_v46, %v2829_v57 }
 0x399   : > { %v1076_v4 = vpop.xlane.xlu1 %1075  ;;  %v2843_v6 = vmax.f32 %v2831_v61, %v1078_v32 }
 0x39a   : > { %v2846_v7 = vmax.f32 %v2836_v0, %v1076_v4  ;;  %v1143_v3 = vmul.f32 1.442695, %v1116_v53 }
 0x39b   : > { %1637 = vst.msk [vmem:[#allocation3 + $0x50] sm:$0xff] %vm1361_vm3, %v2843_v6  ;;  %1180 = vperm.xlu1 %2260, %v2810_v41   ;;  %v1131_v41 = vmul.f32 1.442695, %v1110_v40  ;;  %v1115_v55 = vsub.f32 %v2831_v61, %v2843_v6 }
 0x39c   : > { %1636 = vst.msk [vmem:[#allocation3 + $0x48] sm:$0xff] %vm1361_vm3, %v2846_v7  ;;  %1200 = vperm.xlu0 %2259, %v2846_v7   ;;  %v1082_v54 = vpop.xlane.xlu0 %1081  ;;  %v1114_v14 = vsub.f32 %v2836_v0, %v2846_v7  ;;  %v1113_v0 = vsub.f32 %v2812_v42, %v2826_v52 }
 0x39d   : > { %v1088_v11 = vpop.xlane.xlu1 %1087  ;;  %v2861_v15 = vmax.f32 %v2848_v8, %v1082_v54  ;;  %2269 = vpow2.f32 %v1131_v41  ;;  %v1141_v32 = vmul.f32 1.442695, %v1115_v55 }
 0x39e   : > { %v2864_v33 = vmax.f32 %v2853_v9, %v1088_v11  ;;  %2271 = vpow2.f32 %v1125_v48  ;;  %v2907_v51 = vpop.eup %2265 }
 0x39f   : > { %1639 = vst.msk [vmem:[#allocation3 + $0x60] sm:$0xff] %vm1361_vm3, %v2861_v15  ;;  %1190 = vperm.xlu1 %2260, %v2795_v16   ;;  %v1111_v16 = vsub.f32 %v2798_v24, %v2807_v38  ;;  %2273 = vpow2.f32 %v1135_v50  ;;  %v1139_v24 = vmul.f32 1.442695, %v1114_v14  ;;  %v1117_v7 = vsub.f32 %v2848_v8, %v2861_v15 }
 0x3a0   : > { %v1120_v59 = vsub.f32 %v2853_v9, %v2864_v33  ;;  %1642 = vst.msk [vmem:[#allocation3 + $0x78] sm:$0xff] %vm1361_vm3, %v2864_v33  ;;  %1210 = vperm.xlu0 %2259, %v2829_v57   ;;  %v1086_v62 = vpop.xlane.xlu0 %1085  ;;  %2275 = vpow2.f32 %v1129_v5  ;;  %v2913_v57 = vpop.eup %2267 }
 0x3a1   : > { %v1084_v43 = vpop.xlane.xlu1 %1083  ;;  %v2881_v44 = vmax.f32 %v2866_v34, %v1086_v62  ;;  %v1133_v46 = vmul.f32 1.442695, %v1111_v16  ;;  %2277 = vpow2.f32 %v1143_v3  ;;  %v1145_v54 = vmul.f32 1.442695, %v1117_v7 }
 0x3a2   : > { %v1102_v45 = vmax.f32 %v1054_v36, %v1084_v43 }
 0x3a3   : > { %v1119_v60 = vsub.f32 %v2866_v34, %v2881_v44  ;;  %1641 = vst.msk [vmem:[#allocation3 + $0x70] sm:$0xff] %vm1361_vm3, %v2881_v44  ;;  %1195 = vperm.xlu1 %2260, %v2826_v52   ;;  %2279 = vpow2.f32 %v1133_v46 }
 0x3a4   : > { %1640 = vst.msk [vmem:[#allocation3 + $0x68] sm:$0xff] %vm1361_vm3, %v1102_v45  ;;  %1220 = vperm.xlu0 %2259, %v1102_v45   ;;  %v1118_v38 = vsub.f32 %v1054_v36, %v1102_v45  ;;  %2281 = vpow2.f32 %v1139_v24 }
 0x3a5   : > { %2283 = vpow2.f32 %v1141_v32 }
 0x3a6   : > { %v1147_v61 = vmul.f32 1.442695, %v1118_v38 }
 0x3a7   : > { %1205 = vperm.xlu1 %2260, %v2843_v6   ;;  %v2915_v63 = vpop.eup %2269  ;;  %v1137_v6 = vmul.f32 1.442695, %v1113_v0 }
 0x3a8   : > { %1230 = vperm.xlu0 %2259, %v2864_v33   ;;  %v2921_v2 = vpop.eup %2271  ;;  %2285 = vpow2.f32 %v1147_v61 }
 0x3a9   : > { %v2923_v4 = vpop.eup %2273  ;;  %2287 = vpow2.f32 %v1137_v6 }
 0x3aa   : > { %v2929_v42 = vpop.eup %2275  ;;  %2289 = vpow2.f32 %v1145_v54 }
 0x3ab   : > { %1215 = vperm.xlu1 %2260, %v2861_v15   ;;  %v2931_v52 = vpop.eup %2277 }
 0x3ac   : > { %1396 = vperm.xlu0 %2259, %v2899_v56  }
 0x3ad   : > { %v2935_v58 = vpop.eup %2279 }
 0x3ae   : > { %v2937_v10 = vpop.eup %2281 }
 0x3af   : > { %1225 = vperm.xlu1 %2260, %v2881_v44   ;;  %v2941_v8 = vpop.eup %2283 }
 0x3b0   : > { %1411 = vperm.xlu0 %2259, %v2907_v51  }
 0x3b2   : > { %v2943_v11 = vpop.eup %2285 }
 0x3b3   : > { %1401 = vperm.xlu1 %2260, %v2913_v57   ;;  %v2947_v15 = vpop.eup %2287 }
 0x3b4   : > { %1421 = vperm.xlu0 %2259, %v2915_v63   ;;  %v2950_v36 = vpop.eup %2289 }
 0x3b7   : > { %1406 = vperm.xlu1 %2260, %v2921_v2  }
 0x3b8   : > { %1431 = vperm.xlu0 %2259, %v2923_v4  }
 0x3bb   : > { %1416 = vperm.xlu1 %2260, %v2929_v42  }
 0x3bc   : > { %1451 = vperm.xlu0 %2259, %v2931_v52  }
 0x3bf   : > { %1426 = vperm.xlu1 %2260, %v2935_v58  }
 0x3c0   : > { %1441 = vperm.xlu0 %2259, %v2937_v10  }
 0x3c3   : > { %1446 = vperm.xlu1 %2260, %v2941_v8  }
 0x3c4   : > { %1461 = vperm.xlu0 %2259, %v2943_v11  }
 0x3c7   : > { %1436 = vperm.xlu1 %2260, %v2947_v15  }
 0x3cb   : > { %1456 = vperm.xlu1 %2260, %v2950_v36  }
 0x405   : > { %v1166_v37 = vpop.permute.xlu1 %1165 }
 0x406   : > { %v1235_v62 = vsub.f32 %v2691_v17, %v1166_v37  ;;  %v1156_v39 = vpop.permute.xlu0 %1155 }
 0x407   : > { %v1233_v40 = vsub.f32 %v2694_v12, %v1156_v39 }
 0x408   : > { %v1253_v43 = vmul.f32 1.442695, %v1235_v62 }
 0x409   : > { %v1249_v45 = vmul.f32 1.442695, %v1233_v40  ;;  %v1171_v1 = vpop.permute.xlu1 %1170 }
 0x40a   : > { %2291 = vpow2.f32 %v1253_v43  ;;  %v1236_v47 = vsub.f32 %v2697_v13, %v1171_v1 }
 0x40b   : > { %2293 = vpow2.f32 %v1249_v45 }
 0x40c   : > { %v1255_v35 = vmul.f32 1.442695, %v1236_v47 }
 0x40d   : > { %v1161_v41 = vpop.permute.xlu1 %1160 }
 0x40e   : > { %2295 = vpow2.f32 %v1255_v35  ;;  %v1234_v48 = vsub.f32 %v2699_v18, %v1161_v41 }
 0x410   : > { %v1251_v49 = vmul.f32 1.442695, %v1234_v48 }
 0x412   : > { %2297 = vpow2.f32 %v1251_v49  ;;  %v1186_v50 = vpop.permute.xlu1 %1185 }
 0x413   : > { %v1239_v17 = vsub.f32 %v2703_v19, %v1186_v50 }
 0x414   : > { %v2292_v53 = vpop.eup %2291 }
 0x415   : > { %v2294_v5 = vpop.eup %2293  ;;  %v1261_v12 = vmul.f32 1.442695, %v1239_v17  ;;  %1317 = vadd.xlane.f32.xlu0 %v2292_v53 }
 0x416   : > { %1313 = vadd.xlane.f32.xlu1 %v2294_v5  ;;  %v1176_v16 = vpop.permute.xlu1 %1175 }
 0x417   : > { %2299 = vpow2.f32 %v1261_v12  ;;  %v1237_v13 = vsub.f32 %v2705_v20, %v1176_v16 }
 0x418   : > { %v2296_v3 = vpop.eup %2295 }
 0x419   : > { %v1257_v14 = vmul.f32 1.442695, %v1237_v13  ;;  %v1491_v46 = vpack.c.bf16 %v2296_v3, %v2292_v53 }
 0x41a   : > { %1319 = vadd.xlane.f32.xlu1 %v2296_v3  ;;  %v1181_v55 = vpop.permute.xlu1 %1180 }
 0x41b   : > { %2301 = vpow2.f32 %v1257_v14  ;;  %v1238_v18 = vsub.f32 %v2711_v22, %v1181_v55  ;;  %v1201_v24 = vpop.permute.xlu0 %1200 }
 0x41c   : > { %v2298_v38 = vpop.eup %2297  ;;  %v1242_v32 = vsub.f32 %v2723_v27, %v1201_v24 }
 0x41d   : > { %v1259_v19 = vmul.f32 1.442695, %v1238_v18  ;;  %1315 = vadd.xlane.f32.xlu0 %v2298_v38  ;;  %v1490_v0 = vpack.c.bf16 %v2298_v38, %v2294_v5 }
 0x41e   : > { %v1191_v61 = vpop.permute.xlu1 %1190  ;;  %v1267_v37 = vmul.f32 1.442695, %v1242_v32  ;;  %v1149_v32 = vmul.f32 1.442695, %v1119_v60 }
 0x41f   : > { %2303 = vpow2.f32 %v1259_v19  ;;  %v1240_v6 = vsub.f32 %v2708_v21, %v1191_v61  ;;  %v1211_v20 = vpop.permute.xlu0 %1210  ;;  %2180 = vmatprep.mubr.bf16.mxu1 %v1490_v0  ;;  %v1151_v61 = vmul.f32 1.442695, %v1120_v59 }
 0x420   : > { %2181 = vmatmul.mubr.bf16.vlgmr.msra.gmra.mrb[16].mxu1 %v1491_v46  ;;  %v1244_v62 = vsub.f32 %v2719_v26, %v1211_v20 }
 0x421   : > { %v2300_v7 = vpop.eup %2299  ;;  %v1263_v54 = vmul.f32 1.442695, %v1240_v6 }
 0x422   : > { %1325 = vadd.xlane.f32.xlu0 %v2300_v7  ;;  %v1196_v22 = vpop.permute.xlu1 %1195  ;;  %v1271_v45 = vmul.f32 1.442695, %v1244_v62 }
 0x423   : > { %2305 = vpow2.f32 %v1263_v54  ;;  %v1241_v39 = vsub.f32 %v2717_v25, %v1196_v22  ;;  %v1221_v40 = vpop.permute.xlu0 %1220 }
 0x424   : > { %2307 = vpow2.f32 %v1267_v37  ;;  %v1246_v21 = vsub.f32 %v2735_v31, %v1221_v40 }
 0x425   : > { %v2302_v43 = vpop.eup %2301  ;;  %v1265_v27 = vmul.f32 1.442695, %v1241_v39 }
 0x426   : > { %1321 = vadd.xlane.f32.xlu0 %v2302_v43  ;;  %v1206_v1 = vpop.permute.xlu1 %1205  ;;  %v1275_v48 = vmul.f32 1.442695, %v1246_v21 }
 0x427   : > { %2309 = vpow2.f32 %v1265_v27  ;;  %v1243_v47 = vsub.f32 %v2715_v23, %v1206_v1  ;;  %v1231_v35 = vpop.permute.xlu0 %1230 }
 0x428   : > { %2311 = vpow2.f32 %v1271_v45  ;;  %v1248_v49 = vsub.f32 %v2731_v30, %v1231_v35  ;;  %v1281_v45 = vld [vmem:[#allocation4] sm:$0xff] }
 0x429   : > { %v2304_v41 = vpop.eup %2303  ;;  %v1269_v26 = vmul.f32 1.442695, %v1243_v47  ;;  %v1297_v47 = vmul.f32 %v2899_v56, %v1281_v45  ;;  %v1287_v56 = vld [vmem:[#allocation4 + $0x30] sm:$0xff] }
 0x42a   : > { %v1216_v25 = vpop.permute.xlu1 %1215  ;;  %v1492_v50 = vpack.c.bf16 %v2304_v41, %v2302_v43  ;;  %v1279_v5 = vmul.f32 1.442695, %v1248_v49  ;;  %v1283_v43 = vld [vmem:[#allocation4 + $0x10] sm:$0xff] }
 0x42b   : > { %2313 = vpow2.f32 %v1269_v26  ;;  %v1245_v17 = vsub.f32 %v2729_v29, %v1216_v25  ;;  %v1299_v21 = vmul.f32 %v2921_v2, %v1283_v43  ;;  %v1284_v26 = vld [vmem:[#allocation4 + $0x18] sm:$0xff]  ;;  %v1282_v25 = vld [vmem:[#allocation4 + $0x8] sm:$0xff] }
 0x42c   : > { %2184 = vmatprep.mubr.bf16.mxu1 %v1492_v50  ;;  %2315 = vpow2.f32 %v1275_v48  ;;  %v1300_v49 = vmul.f32 %v2907_v51, %v1284_v26 }
 0x42d   : > { %v2306_v53 = vpop.eup %2305  ;;  %v1273_v31 = vmul.f32 1.442695, %v1245_v17 }
 0x42e   : > { %1327 = vadd.xlane.f32.xlu1 %v2306_v53  ;;  %v1226_v12 = vpop.permute.xlu1 %1225  ;;  %v1493_v23 = vpack.c.bf16 %v2306_v53, %v2300_v7  ;;  %v2308_v13 = vpop.eup %2307  ;;  %v1298_v53 = vmul.f32 %v2913_v57, %v1282_v25  ;;  %v1288_v57 = vld [vmem:[#allocation4 + $0x38] sm:$0xff]  ;;  %v1293_v25 = vld [vmem:[#allocation4 + $0x60] sm:$0xff] }
 0x42f   : > { %2317 = vpow2.f32 %v1273_v31  ;;  %v1247_v16 = vsub.f32 %v2727_v28, %v1226_v12  ;;  %v2981_v7 = vpop.permute.xlu0 %1396 }
 0x430   : > { %2185 = vmatmul.mubr.bf16.gmra.mrb[20].mxu1 %v1493_v23  ;;  %2319 = vpow2.f32 %v1279_v5  ;;  %v1303_v5 = vmul.f32 %v2935_v58, %v1287_v56  ;;  %v1285_v23 = vld [vmem:[#allocation4 + $0x20] sm:$0xff] }
 0x431   : > { %v2310_v3 = vpop.eup %2309  ;;  %v1277_v30 = vmul.f32 1.442695, %v1247_v16  ;;  %v1301_v51 = vmul.f32 %v2929_v42, %v1285_v23  ;;  %v1379_v23 = vld [vmem:[#allocation5 + $0x8] sm:$0xff] }
 0x432   : > { %1323 = vadd.xlane.f32.xlu1 %v2304_v41  ;;  %v1494_v14 = vpack.c.bf16 %v2308_v13, %v2310_v3  ;;  %v2312_v29 = vpop.eup %2311  ;;  %v2983_v54 = vpop.permute.xlu1 %1401 }
 0x433   : > { %2321 = vpow2.f32 %v1277_v30  ;;  %v2985_v34 = vpop.permute.xlu0 %1411  ;;  %v1304_v30 = vmul.f32 %v2923_v4, %v1288_v57  ;;  %v1289_v4 = vld [vmem:[#allocation4 + $0x40] sm:$0xff]  ;;  %v1475_v57 = vmul.f32 %v2983_v54, %v1379_v23 }
 0x434   : > { %2188 = vmatprep.mubr.bf16.mxu1 %v1494_v14  ;;  %2323 = vpow2.f32 %v1149_v32  ;;  %v1290_v32 = vld [vmem:[#allocation4 + $0x48] sm:$0xff] }
 0x435   : > { %v2314_v46 = vpop.eup %2313  ;;  %2325 = vpow2.f32 %v1151_v61  ;;  %v1306_v45 = vmul.f32 %v2937_v10, %v1290_v32 }
 0x436   : > { %1335 = vadd.xlane.f32.xlu1 %v2312_v29  ;;  %1333 = vadd.xlane.f32.xlu0 %v2314_v46  ;;  %v1495_v55 = vpack.c.bf16 %v2312_v29, %v2314_v46  ;;  %v2316_v18 = vpop.eup %2315  ;;  %v2987_v44 = vpop.permute.xlu1 %1406  ;;  %v1286_v29 = vld [vmem:[#allocation4 + $0x28] sm:$0xff] }
 0x437   : > { %v2989_v60 = vpop.permute.xlu0 %1421  ;;  %v1302_v58 = vmul.f32 %v2915_v63, %v1286_v29  ;;  %v1305_v63 = vmul.f32 %v2947_v15, %v1289_v4  ;;  %v1294_v15 = vld [vmem:[#allocation4 + $0x68] sm:$0xff] }
 0x438   : > { %2189 = vmatmul.mubr.bf16.gmra.mrb[24].mxu1 %v1495_v55 }
 0x439   : > { %v2318_v24 = vpop.eup %2317 }
 0x43a   : > { %1331 = vadd.xlane.f32.xlu1 %v2308_v13  ;;  %1329 = vadd.xlane.f32.xlu0 %v2310_v3  ;;  %v1496_v28 = vpack.c.bf16 %v2316_v18, %v2318_v24  ;;  %v2320_v38 = vpop.eup %2319  ;;  %v2991_v9 = vpop.permute.xlu1 %1416 }
 0x43b   : > { %v2993_v33 = vpop.permute.xlu0 %1431 }
 0x43c   : > { %2192 = vmatprep.mubr.bf16.mxu1 %v1496_v28 }
 0x43d   : > { %v2322_v19 = vpop.eup %2321 }
 0x43e   : > { %1343 = vadd.xlane.f32.xlu1 %v2320_v38  ;;  %1341 = vadd.xlane.f32.xlu0 %v2322_v19  ;;  %v1497_v0 = vpack.c.bf16 %v2320_v38, %v2322_v19  ;;  %v2975_v6 = vpop.eup %2323  ;;  %v2995_v59 = vpop.permute.xlu1 %1426 }
 0x43f   : > { %v2978_v20 = vpop.eup %2325  ;;  %v2997_v37 = vpop.permute.xlu0 %1451 }
 0x440   : > { %2193 = vmatmul.mubr.bf16.gmra.mrb[28].mxu1 %v1497_v0 }
 0x442   : > { %1339 = vadd.xlane.f32.xlu1 %v2316_v18  ;;  %1337 = vadd.xlane.f32.xlu0 %v2318_v24  ;;  %v2999_v62 = vpop.permute.xlu1 %1446  ;;  %v1291_v18 = vld [vmem:[#allocation4 + $0x50] sm:$0xff]  ;;  %v1292_v24 = vld [vmem:[#allocation4 + $0x58] sm:$0xff] }
 0x443   : > { %v3001_v22 = vpop.permute.xlu0 %1441  ;;  %v1307_v42 = vmul.f32 %v2941_v8, %v1291_v18  ;;  %v1308_v38 = vmul.f32 %v2931_v52, %v1292_v24  ;;  %v1296_v8 = vld [vmem:[#allocation4 + $0x78] sm:$0xff] }
 0x444   : > { %v1312_v26 = vmul.f32 %v2978_v20, %v1296_v8 }
 0x446   : > { %v3003_v39 = vpop.permute.xlu1 %1436 }
 0x447   : > { %v3005_v40 = vpop.permute.xlu0 %1461 }
 0x44a   : > { %v3007_v27 = vpop.permute.xlu1 %1456 }
 0x453   : > { %1466 = vperm.xlu1 %2260, %v2975_v6  }
 0x458   : > { %1471 = vperm.xlu0 %2259, %v2978_v20   ;;  %v1380_v20 = vld [vmem:[#allocation5 + $0x10] sm:$0xff] }
 0x4a2   : > { %v1318_v1 = vpop.xlane.xlu0 %1317 }
 0x4a3   : > { %v1347_v35 = vadd.f32 %v1318_v1, %v1299_v21  ;;  %v1314_v41 = vpop.xlane.xlu1 %1313 }
 0x4a4   : > { %v1345_v48 = vadd.f32 %v1314_v41, %v1297_v47  ;;  %v1295_v47 = vld [vmem:[#allocation4 + $0x70] sm:$0xff] }
 0x4a5   : > { %1364 = vst.msk [vmem:[#allocation4 + $0x10] sm:$0xff] %vm1361_vm3, %v1347_v35  ;;  %v1311_v41 = vmul.f32 %v2975_v6, %v1295_v47 }
 0x4a6   : > { %1362 = vst.msk [vmem:[#allocation4] sm:$0xff] %vm1361_vm3, %v1345_v48 }
 0x4a7   : > { %v1320_v50 = vpop.xlane.xlu1 %1319 }
 0x4a8   : > { %v1348_v17 = vadd.f32 %v1320_v50, %v1300_v49 }
 0x4aa   : > { %1365 = vst.msk [vmem:[#allocation4 + $0x18] sm:$0xff] %vm1361_vm3, %v1348_v17  ;;  %v1316_v2 = vpop.xlane.xlu0 %1315  ;;  %v1309_v17 = vmul.f32 %v2950_v36, %v1293_v25 }
 0x4ab   : > { %v1346_v31 = vadd.f32 %v1316_v2, %v1298_v53  ;;  %v1310_v53 = vmul.f32 %v2943_v11, %v1294_v15  ;;  %v1390_v15 = vld [vmem:[#allocation5 + $0x60] sm:$0xff] }
 0x4ad   : > { %1363 = vst.msk [vmem:[#allocation4 + $0x8] sm:$0xff] %vm1361_vm3, %v1346_v31 }
 0x4af   : > { %v1326_v12 = vpop.xlane.xlu0 %1325 }
 0x4b0   : > { %v1351_v16 = vadd.f32 %v1326_v12, %v1303_v5  ;;  %v1378_v5 = vld [vmem:[#allocation5] sm:$0xff]  ;;  %v1381_v12 = vld [vmem:[#allocation5 + $0x18] sm:$0xff] }
 0x4b1   : > { %v1477_v36 = vmul.f32 %v2985_v34, %v1381_v12  ;;  %v1385_v34 = vld [vmem:[#allocation5 + $0x38] sm:$0xff] }
 0x4b2   : > { %1368 = vst.msk [vmem:[#allocation4 + $0x30] sm:$0xff] %vm1361_vm3, %v1351_v16  ;;  %v1476_v16 = vmul.f32 %v2987_v44, %v1380_v20  ;;  %v1382_v44 = vld [vmem:[#allocation5 + $0x20] sm:$0xff] }
 0x4b3   : > { %v1322_v13 = vpop.xlane.xlu0 %1321  ;;  %v1478_v54 = vmul.f32 %v2991_v9, %v1382_v44  ;;  %v1389_v9 = vld [vmem:[#allocation5 + $0x58] sm:$0xff] }
 0x4b4   : > { %v1349_v3 = vadd.f32 %v1322_v13, %v1301_v51  ;;  %v1474_v51 = vmul.f32 %v2981_v7, %v1378_v5  ;;  %v1384_v7 = vld [vmem:[#allocation5 + $0x30] sm:$0xff] }
 0x4b5   : > { %v1480_v18 = vmul.f32 %v2995_v59, %v1384_v7  ;;  %v1386_v59 = vld [vmem:[#allocation5 + $0x40] sm:$0xff] }
 0x4b6   : > { %1366 = vst.msk [vmem:[#allocation4 + $0x20] sm:$0xff] %vm1361_vm3, %v1349_v3 }
 0x4bb   : > { %v1328_v14 = vpop.xlane.xlu1 %1327 }
 0x4bc   : > { %v1352_v46 = vadd.f32 %v1328_v14, %v1304_v30 }
 0x4be   : > { %1369 = vst.msk [vmem:[#allocation4 + $0x38] sm:$0xff] %vm1361_vm3, %v1352_v46 }
 0x4bf   : > { %v1324_v55 = vpop.xlane.xlu1 %1323 }
 0x4c0   : > { %v1350_v28 = vadd.f32 %v1324_v55, %v1302_v58  ;;  %v1383_v55 = vld [vmem:[#allocation5 + $0x28] sm:$0xff] }
 0x4c2   : > { %1367 = vst.msk [vmem:[#allocation4 + $0x28] sm:$0xff] %vm1361_vm3, %v1350_v28  ;;  %v1481_v28 = vmul.f32 %v2993_v33, %v1385_v34  ;;  %v1387_v33 = vld [vmem:[#allocation5 + $0x48] sm:$0xff] }
 0x4c3   : > { %v1334_v19 = vpop.xlane.xlu0 %1333  ;;  %v1336_v0 = vpop.xlane.xlu1 %1335 }
 0x4c4   : > { %v1355_v61 = vadd.f32 %v1334_v19, %v1307_v42  ;;  %v1356_v43 = vadd.f32 %v1336_v0, %v1308_v38  ;;  %v1479_v19 = vmul.f32 %v2989_v60, %v1383_v55  ;;  %v1482_v60 = vmul.f32 %v3003_v39, %v1386_v59  ;;  %v1393_v39 = vld [vmem:[#allocation5 + $0x78] sm:$0xff] }
 0x4c6   : > { %1372 = vst.msk [vmem:[#allocation4 + $0x50] sm:$0xff] %vm1361_vm3, %v1355_v61  ;;  %1373 = vst.msk [vmem:[#allocation4 + $0x58] sm:$0xff] %vm1361_vm3, %v1356_v43  ;;  %v1388_v43 = vld [vmem:[#allocation5 + $0x50] sm:$0xff] }
 0x4c7   : > { %v1330_v21 = vpop.xlane.xlu0 %1329  ;;  %v1332_v1 = vpop.xlane.xlu1 %1331 }
 0x4c8   : > { %v1353_v35 = vadd.f32 %v1330_v21, %v1305_v63  ;;  %v1354_v52 = vadd.f32 %v1332_v1, %v1306_v45  ;;  %v1484_v45 = vmul.f32 %v2999_v62, %v1388_v43  ;;  %v1485_v1 = vmul.f32 %v2997_v37, %v1389_v9 }
 0x4ca   : > { %1370 = vst.msk [vmem:[#allocation4 + $0x40] sm:$0xff] %vm1361_vm3, %v1353_v35  ;;  %1371 = vst.msk [vmem:[#allocation4 + $0x48] sm:$0xff] %vm1361_vm3, %v1354_v52  ;;  %v1483_v35 = vmul.f32 %v3001_v22, %v1387_v33 }
 0x4cb   : > { %v1342_v48 = vpop.xlane.xlu0 %1341  ;;  %v1344_v49 = vpop.xlane.xlu1 %1343 }
 0x4cc   : > { %v1359_v50 = vadd.f32 %v1342_v48, %v1311_v41  ;;  %v1360_v10 = vadd.f32 %v1344_v49, %v1312_v26  ;;  %v1392_v49 = vld [vmem:[#allocation5 + $0x70] sm:$0xff] }
 0x4cd   : > { %v1658_v44 = vld [vmem:[#allocation4 + $0x58] sm:$0xff] (!%p2016_p10)  ;;  %v1657_v55 = vld [vmem:[#allocation4 + $0x50] sm:$0xff] (!%p2016_p10) }
 0x4ce   : > { %1376 = vst.msk [vmem:[#allocation4 + $0x70] sm:$0xff] %vm1361_vm3, %v1359_v50  ;;  %1377 = vst.msk [vmem:[#allocation4 + $0x78] sm:$0xff] %vm1361_vm3, %v1360_v10  ;;  %v1391_v50 = vld [vmem:[#allocation5 + $0x68] sm:$0xff]  ;;  %v1486_v10 = vmul.f32 %v3007_v27, %v1390_v15  ;;  %v1649_v27 = vld [vmem:[#allocation4 + $0x10] sm:$0xff] (!%p2016_p10) }
 0x4cf   : > { %v1338_v2 = vpop.xlane.xlu0 %1337  ;;  %v1340_v31 = vpop.xlane.xlu1 %1339  ;;  %2329 = vrcp.f32 (!%p2016_p10), %v1649_v27 }
 0x4d0   : > { %v1357_v56 = vadd.f32 %v1338_v2, %v1309_v17  ;;  %v1358_v6 = vadd.f32 %v1340_v31, %v1310_v53 }
 0x4d2   : > { %1374 = vst.msk [vmem:[#allocation4 + $0x60] sm:$0xff] %vm1361_vm3, %v1357_v56  ;;  %1375 = vst.msk [vmem:[#allocation4 + $0x68] sm:$0xff] %vm1361_vm3, %v1358_v6  ;;  %v1487_v56 = vmul.f32 %v3005_v40, %v1391_v50  ;;  %v2420_v40 = vmov (!%p2016_p10), 0   ;;  %v1812_v50 = vld [vmem:[%s2522_s27 + $0x18] sm:$0xff] (!%p2016_p10) }
 0x4d3   : > { %v1467_v25 = vpop.permute.xlu1 %1466  ;;  %2328 = vset.pattern.permute.xlu1 (!%p2016_p10), %v2420_v40  ;;  %2327 = vset.pattern.permute.xlu0 (!%p2016_p10), %v2420_v40  ;;  %v1813_v40 = vld [vmem:[%s2522_s27 + $0x20] sm:$0xff] (!%p2016_p10) }
 0x4d4   : > { %v1488_v22 = vmul.f32 %v1467_v25, %v1392_v49 }
 0x4d7   : > { %v1472_v37 = vpop.permute.xlu0 %1471 }
 0x4d8   : > { %v1489_v53 = vmul.f32 %v1472_v37, %v1393_v39 }
 0x4f3   : > { %v2182_v13 = vpop.f32.mrb[16].mxu1 }
 0x4f4   : > { %v1597_v11 = vadd.f32 %v2182_v13, %v1476_v16  ;;  %v1532_v3 = vpop.f32.mrb[17].mxu1  ;;  %v1647_v16 = vld [vmem:[#allocation4] sm:$0xff] (!%p2016_p10)  ;;  %v1648_v13 = vld [vmem:[#allocation4 + $0x8] sm:$0xff] (!%p2016_p10) }
 0x4f5   : > { %v1595_v30 = vadd.f32 %v1532_v3, %v1474_v51  ;;  %v2183_v14 = vpop.f32.mrb[18].mxu1  ;;  %v1650_v51 = vld [vmem:[#allocation4 + $0x18] sm:$0xff] (!%p2016_p10)  ;;  %2331 = vrcp.f32 (!%p2016_p10), %v1647_v16 }
 0x4f6   : > { %1613 = vst.msk [vmem:[#allocation5 + $0x10] sm:$0xff] %vm686_vm2, %v1597_v11  ;;  %v1598_v29 = vadd.f32 %v2183_v14, %v1477_v36  ;;  %v1535_v46 = vpop.f32.mrb[19].mxu1  ;;  %2333 = vrcp.f32 (!%p2016_p10), %v1650_v51  ;;  %v1652_v36 = vld [vmem:[#allocation4 + $0x28] sm:$0xff] (!%p2016_p10)  ;;  %v1651_v11 = vld [vmem:[#allocation4 + $0x20] sm:$0xff] (!%p2016_p10)  ;;  %v1654_v3 = vld [vmem:[#allocation4 + $0x38] sm:$0xff] (!%p2016_p10) }
 0x4f7   : > { %1611 = vst.msk [vmem:[#allocation5] sm:$0xff] %vm686_vm2, %v1595_v30  ;;  %v1596_v58 = vadd.f32 %v1535_v46, %v1475_v57  ;;  %2335 = vrcp.f32 (!%p2016_p10), %v1648_v13  ;;  %v1653_v57 = vld [vmem:[#allocation4 + $0x30] sm:$0xff] (!%p2016_p10)  ;;  %v2330_v30 = vpop.eup (!%p2016_p10), %2329 }
 0x4f8   : > { %1614 = vst.msk [vmem:[#allocation5 + $0x18] sm:$0xff] %vm686_vm2, %v1598_v29  ;;  %2337 = vrcp.f32 (!%p2016_p10), %v1652_v36  ;;  %1708 = vperm.xlu1 (!%p2016_p10), %2328, %v2330_v30   ;;  %v1656_v29 = vld [vmem:[#allocation4 + $0x48] sm:$0xff] (!%p2016_p10) }
 0x4f9   : > { %1612 = vst.msk [vmem:[#allocation5 + $0x8] sm:$0xff] %vm686_vm2, %v1596_v58  ;;  %2339 = vrcp.f32 (!%p2016_p10), %v1651_v11  ;;  %v1655_v58 = vld [vmem:[#allocation4 + $0x40] sm:$0xff] (!%p2016_p10) }
 0x4fa   : > { %2341 = vrcp.f32 (!%p2016_p10), %v1654_v3 }
 0x4fb   : > { %2343 = vrcp.f32 (!%p2016_p10), %v1653_v57 }
 0x4fc   : > { %2345 = vrcp.f32 (!%p2016_p10), %v1656_v29  ;;  %v1816_v29 = vld [vmem:[%s2522_s27 + $0x38] sm:$0xff] (!%p2016_p10) }
 0x4fd   : > { %2347 = vrcp.f32 (!%p2016_p10), %v1655_v58  ;;  %v1682_v33 = vld [vmem:[#allocation5 + $0x10] sm:$0xff] (!%p2016_p10) }
 0x4fe   : > { %2349 = vrcp.f32 (!%p2016_p10), %v1658_v44  ;;  %v1815_v44 = vld [vmem:[%s2522_s27 + $0x30] sm:$0xff] (!%p2016_p10) }
 0x4ff   : > { %v2332_v14 = vpop.eup (!%p2016_p10), %2331  ;;  %2351 = vrcp.f32 (!%p2016_p10), %v1657_v55 }
 0x500   : > { %v2334_v46 = vpop.eup (!%p2016_p10), %2333  ;;  %1698 = vperm.xlu0 (!%p2016_p10), %2327, %v2332_v14  }
 0x501   : > { %v2336_v7 = vpop.eup (!%p2016_p10), %2335  ;;  %1713 = vperm.xlu1 (!%p2016_p10), %2328, %v2334_v46  }
 0x502   : > { %v2338_v34 = vpop.eup (!%p2016_p10), %2337 }
 0x503   : > { %v2186_v24 = vpop.f32.mrb[20].mxu1 }
 0x504   : > { %v1601_v42 = vadd.f32 %v2186_v24, %v1480_v18  ;;  %v1548_v38 = vpop.f32.mrb[21].mxu1  ;;  %1703 = vperm.xlu0 (!%p2016_p10), %2327, %v2336_v7   ;;  %v2340_v18 = vpop.eup (!%p2016_p10), %2339 }
 0x505   : > { %v1599_v0 = vadd.f32 %v1548_v38, %v1478_v54  ;;  %v2187_v4 = vpop.f32.mrb[22].mxu1  ;;  %1723 = vperm.xlu1 (!%p2016_p10), %2328, %v2338_v34   ;;  %v1660_v54 = vld [vmem:[#allocation4 + $0x68] sm:$0xff] (!%p2016_p10)  ;;  %v2342_v24 = vpop.eup (!%p2016_p10), %2341  ;;  %v1662_v38 = vld [vmem:[#allocation4 + $0x78] sm:$0xff] (!%p2016_p10) }
 0x506   : > { %1617 = vst.msk [vmem:[#allocation5 + $0x30] sm:$0xff] %vm686_vm2, %v1601_v42  ;;  %v1602_v32 = vadd.f32 %v2187_v4, %v1481_v28  ;;  %v1551_v61 = vpop.f32.mrb[23].mxu1  ;;  %v1659_v28 = vld [vmem:[#allocation4 + $0x60] sm:$0xff] (!%p2016_p10)  ;;  %v2344_v42 = vpop.eup (!%p2016_p10), %2343  ;;  %2353 = vrcp.f32 (!%p2016_p10), %v1660_v54 }
 0x507   : > { %1615 = vst.msk [vmem:[#allocation5 + $0x20] sm:$0xff] %vm686_vm2, %v1599_v0  ;;  %v1600_v63 = vadd.f32 %v1551_v61, %v1479_v19  ;;  %2355 = vrcp.f32 (!%p2016_p10), %v1659_v28  ;;  %v2346_v19 = vpop.eup (!%p2016_p10), %2345  ;;  %v1661_v0 = vld [vmem:[#allocation4 + $0x70] sm:$0xff] (!%p2016_p10) }
 0x508   : > { %1618 = vst.msk [vmem:[#allocation5 + $0x38] sm:$0xff] %vm686_vm2, %v1602_v32  ;;  %1718 = vperm.xlu0 (!%p2016_p10), %2327, %v2340_v18   ;;  %v2348_v4 = vpop.eup (!%p2016_p10), %2347  ;;  %2357 = vrcp.f32 (!%p2016_p10), %v1662_v38  ;;  %v1818_v38 = vld [vmem:[%s2522_s27 + $0x48] sm:$0xff] (!%p2016_p10) }
 0x509   : > { %1616 = vst.msk [vmem:[#allocation5 + $0x28] sm:$0xff] %vm686_vm2, %v1600_v63  ;;  %1733 = vperm.xlu1 (!%p2016_p10), %2328, %v2342_v24   ;;  %2359 = vrcp.f32 (!%p2016_p10), %v1661_v0  ;;  %v2350_v32 = vpop.eup (!%p2016_p10), %2349 }
 0x50a   : > { %v2352_v61 = vpop.eup (!%p2016_p10), %2351 }
 0x50b   : > { %v2190_v21 = vpop.f32.mrb[24].mxu1 }
 0x50c   : > { %v1605_v47 = vadd.f32 %v2190_v21, %v1484_v45  ;;  %v1564_v8 = vpop.f32.mrb[25].mxu1  ;;  %1728 = vperm.xlu0 (!%p2016_p10), %2327, %v2344_v42   ;;  %v1680_v45 = vld [vmem:[#allocation5] sm:$0xff] (!%p2016_p10) }
 0x50d   : > { %v1603_v52 = vadd.f32 %v1564_v8, %v1482_v60  ;;  %v2191_v41 = vpop.f32.mrb[26].mxu1  ;;  %1743 = vperm.xlu1 (!%p2016_p10), %2328, %v2346_v19   ;;  %v3072_v60 = vstv (!%p2016_p10), %s1679_s11  ;;  %v1811_v8 = vld [vmem:[%s2522_s27 + $0x10] sm:$0xff] (!%p2016_p10) }
 0x50e   : > { %1621 = vst.msk [vmem:[#allocation5 + $0x50] sm:$0xff] %vm686_vm2, %v1605_v47  ;;  %v1606_v26 = vadd.f32 %v2191_v41, %v1485_v1  ;;  %v1567_v48 = vpop.f32.mrb[27].mxu1  ;;  %v1686_v13 = vld [vmem:[#allocation5 + $0x30] sm:$0xff] (!%p2016_p10) }
 0x50f   : > { %1619 = vst.msk [vmem:[#allocation5 + $0x40] sm:$0xff] %vm686_vm2, %v1603_v52  ;;  %v1604_v62 = vadd.f32 %v1567_v48, %v1483_v35  ;;  %v1683_v52 = vld [vmem:[#allocation5 + $0x18] sm:$0xff] (!%p2016_p10)  ;;  %v1681_v48 = vld [vmem:[#allocation5 + $0x8] sm:$0xff] (!%p2016_p10) }
 0x510   : > { %1622 = vst.msk [vmem:[#allocation5 + $0x58] sm:$0xff] %vm686_vm2, %v1606_v26  ;;  %1738 = vperm.xlu0 (!%p2016_p10), %2327, %v2348_v4   ;;  %v2354_v43 = vpop.eup (!%p2016_p10), %2353  ;;  %v1809_v26 = vld [vmem:[%s2522_s27] sm:$0xff] (!%p2016_p10)  ;;  %v1687_v16 = vld [vmem:[#allocation5 + $0x38] sm:$0xff] (!%p2016_p10) }
 0x511   : > { %1620 = vst.msk [vmem:[#allocation5 + $0x48] sm:$0xff] %vm686_vm2, %v1604_v62  ;;  %1753 = vperm.xlu1 (!%p2016_p10), %2328, %v2350_v32   ;;  %v2356_v63 = vpop.eup (!%p2016_p10), %2355  ;;  %v1817_v32 = vld [vmem:[%s2522_s27 + $0x40] sm:$0xff] (!%p2016_p10) }
 0x512   : > { %v2358_v59 = vpop.eup (!%p2016_p10), %2357 }
 0x513   : > { %v2194_v17 = vpop.f32.mrb[28].mxu1  ;;  %1646 = sbr.rel (%p2016_p10) target bundleno = 1443 (0x5a3), region = 64  ;;  %v2360_v9 = vpop.eup (!%p2016_p10), %2359 }
 0x514   : > { %v1609_v2 = vadd.f32 %v2194_v17, %v1488_v22  ;;  %v1580_v31 = vpop.f32.mrb[29].mxu1  ;;  %1748 = vperm.xlu0 (!%p2016_p10), %2327, %v2352_v61  }
 0x515   : > { %v1607_v6 = vadd.f32 %v1580_v31, %v1486_v10  ;;  %v2195_v20 = vpop.f32.mrb[30].mxu1  ;;  %1763 = vperm.xlu1 (!%p2016_p10), %2328, %v2354_v43   ;;  %v1685_v10 = vld [vmem:[#allocation5 + $0x28] sm:$0xff] (!%p2016_p10)  ;;  %v1690_v61 = vld [vmem:[#allocation5 + $0x50] sm:$0xff] (!%p2016_p10) }
 0x516   : > { %1625 = vst.msk [vmem:[#allocation5 + $0x70] sm:$0xff] %vm686_vm2, %v1609_v2  ;;  %v1610_v5 = vadd.f32 %v2195_v20, %v1489_v53  ;;  %v1583_v12 = vpop.f32.mrb[31].mxu1  ;;  %v1810_v53 = vld [vmem:[%s2522_s27 + $0x8] sm:$0xff] (!%p2016_p10)  ;;  %v1684_v2 = vld [vmem:[#allocation5 + $0x20] sm:$0xff] (!%p2016_p10) }
 0x517   : > { %1623 = vst.msk [vmem:[#allocation5 + $0x60] sm:$0xff] %vm686_vm2, %v1607_v6  ;;  %v1608_v23 = vadd.f32 %v1583_v12, %v1487_v56  ;;  %v1688_v34 = vld [vmem:[#allocation5 + $0x40] sm:$0xff] (!%p2016_p10)  ;;  %v1691_v0 = vld [vmem:[#allocation5 + $0x58] sm:$0xff] (!%p2016_p10) }
 0x518   : > { %1626 = vst.msk [vmem:[#allocation5 + $0x78] sm:$0xff] %vm686_vm2, %v1610_v5  ;;  %1758 = vperm.xlu0 (!%p2016_p10), %2327, %v2356_v63   ;;  %v1689_v58 = vld [vmem:[#allocation5 + $0x48] sm:$0xff] (!%p2016_p10) }
 0x519   : > { %1624 = vst.msk [vmem:[#allocation5 + $0x68] sm:$0xff] %vm686_vm2, %v1608_v23  ;;  %1773 = vperm.xlu1 (!%p2016_p10), %2328, %v2358_v59   ;;  %v1814_v23 = vld [vmem:[%s2522_s27 + $0x28] sm:$0xff] (!%p2016_p10) }
 0x51c   : > { %1768 = vperm.xlu0 %2327, %v2360_v9  }
 0x577   : > { %v1709_v21 = vpop.permute.xlu1 %1708 }
 0x578   : > { %v1778_v1 = vmul.f32 %v1709_v21, %v1682_v33  ;;  %v1820_v21 = vld [vmem:[%s2522_s27 + $0x58] sm:$0xff] }
 0x57a   : > { %v1795_v41 = vmul.f32 %v3072_v60, %v1778_v1 }
 0x57c   : > { %v1827_v62 = vadd.f32 %v1811_v8, %v1795_v41 }
 0x57e   : > { %1843 = vst.msk [vmem:[%s2527_s30 + $0x10] sm:$0xff] %vm686_vm2, %v1827_v62 }
 0x57f   : > { %v1699_v47 = vpop.permute.xlu0 %1698 }
 0x580   : > { %v1776_v35 = vmul.f32 %v1699_v47, %v1680_v45  ;;  %v1714_v25 = vpop.permute.xlu1 %1713  ;;  %v1693_v47 = vld [vmem:[#allocation5 + $0x68] sm:$0xff] }
 0x581   : > { %v1779_v15 = vmul.f32 %v1714_v25, %v1683_v52  ;;  %v1692_v52 = vld [vmem:[#allocation5 + $0x60] sm:$0xff] }
 0x582   : > { %v1793_v49 = vmul.f32 %v3072_v60, %v1776_v35  ;;  %v1819_v35 = vld [vmem:[%s2522_s27 + $0x50] sm:$0xff] }
 0x583   : > { %v1704_v39 = vpop.permute.xlu0 %1703  ;;  %v1796_v17 = vmul.f32 %v3072_v60, %v1779_v15  ;;  %v1822_v15 = vld [vmem:[%s2522_s27 + $0x68] sm:$0xff] }
 0x584   : > { %v1825_v37 = vadd.f32 %v1809_v26, %v1793_v49  ;;  %v1777_v22 = vmul.f32 %v1704_v39, %v1681_v48  ;;  %v1724_v56 = vpop.permute.xlu1 %1723 }
 0x585   : > { %v1828_v6 = vadd.f32 %v1812_v50, %v1796_v17  ;;  %v1781_v20 = vmul.f32 %v1724_v56, %v1685_v10  ;;  %v1694_v10 = vld [vmem:[#allocation5 + $0x70] sm:$0xff] }
 0x586   : > { %1841 = vst.msk [vmem:[%s2527_s30] sm:$0xff] %vm686_vm2, %v1825_v37  ;;  %v1794_v31 = vmul.f32 %v3072_v60, %v1777_v22  ;;  %v1695_v37 = vld [vmem:[#allocation5 + $0x78] sm:$0xff]  ;;  %v1821_v22 = vld [vmem:[%s2522_s27 + $0x60] sm:$0xff] }
 0x587   : > { %v1719_v5 = vpop.permute.xlu0 %1718  ;;  %1844 = vst.msk [vmem:[%s2527_s30 + $0x18] sm:$0xff] %vm686_vm2, %v1828_v6  ;;  %v1798_v51 = vmul.f32 %v3072_v60, %v1781_v20  ;;  %v1824_v20 = vld [vmem:[%s2522_s27 + $0x78] sm:$0xff] }
 0x588   : > { %v1826_v12 = vadd.f32 %v1810_v53, %v1794_v31  ;;  %v1780_v27 = vmul.f32 %v1719_v5, %v1684_v2  ;;  %v1734_v11 = vpop.permute.xlu1 %1733 }
 0x589   : > { %v1830_v3 = vadd.f32 %v1814_v23, %v1798_v51  ;;  %v1783_v57 = vmul.f32 %v1734_v11, %v1687_v16  ;;  %v1823_v23 = vld [vmem:[%s2522_s27 + $0x70] sm:$0xff] }
 0x58a   : > { %1842 = vst.msk [vmem:[%s2527_s30 + $0x8] sm:$0xff] %vm686_vm2, %v1826_v12  ;;  %v1797_v36 = vmul.f32 %v3072_v60, %v1780_v27 }
 0x58b   : > { %v1729_v30 = vpop.permute.xlu0 %1728  ;;  %1846 = vst.msk [vmem:[%s2527_s30 + $0x28] sm:$0xff] %vm686_vm2, %v1830_v3  ;;  %v1800_v7 = vmul.f32 %v3072_v60, %v1783_v57 }
 0x58c   : > { %v1829_v14 = vadd.f32 %v1813_v40, %v1797_v36  ;;  %v1782_v46 = vmul.f32 %v1729_v30, %v1686_v13  ;;  %v1744_v18 = vpop.permute.xlu1 %1743 }
 0x58d   : > { %v1832_v54 = vadd.f32 %v1816_v29, %v1800_v7  ;;  %v1785_v24 = vmul.f32 %v1744_v18, %v1689_v58 }
 0x58e   : > { %1845 = vst.msk [vmem:[%s2527_s30 + $0x20] sm:$0xff] %vm686_vm2, %v1829_v14  ;;  %v1799_v55 = vmul.f32 %v3072_v60, %v1782_v46 }
 0x58f   : > { %v1739_v28 = vpop.permute.xlu0 %1738  ;;  %1848 = vst.msk [vmem:[%s2527_s30 + $0x38] sm:$0xff] %vm686_vm2, %v1832_v54  ;;  %v1802_v4 = vmul.f32 %v3072_v60, %v1785_v24 }
 0x590   : > { %v1831_v42 = vadd.f32 %v1815_v44, %v1799_v55  ;;  %v1784_v19 = vmul.f32 %v1739_v28, %v1688_v34  ;;  %v1754_v63 = vpop.permute.xlu1 %1753 }
 0x591   : > { %v1834_v59 = vadd.f32 %v1818_v38, %v1802_v4  ;;  %v1787_v9 = vmul.f32 %v1754_v63, %v1691_v0 }
 0x592   : > { %1847 = vst.msk [vmem:[%s2527_s30 + $0x30] sm:$0xff] %vm686_vm2, %v1831_v42  ;;  %v1801_v43 = vmul.f32 %v3072_v60, %v1784_v19 }
 0x593   : > { %v1749_v33 = vpop.permute.xlu0 %1748  ;;  %1850 = vst.msk [vmem:[%s2527_s30 + $0x48] sm:$0xff] %vm686_vm2, %v1834_v59  ;;  %v1804_v8 = vmul.f32 %v3072_v60, %v1787_v9 }
 0x594   : > { %v1833_v45 = vadd.f32 %v1817_v32, %v1801_v43  ;;  %v1786_v1 = vmul.f32 %v1749_v33, %v1690_v61  ;;  %v1764_v26 = vpop.permute.xlu1 %1763 }
 0x595   : > { %v1836_v48 = vadd.f32 %v1820_v21, %v1804_v8  ;;  %v1789_v49 = vmul.f32 %v1764_v26, %v1693_v47 }
 0x596   : > { %1849 = vst.msk [vmem:[%s2527_s30 + $0x40] sm:$0xff] %vm686_vm2, %v1833_v45  ;;  %v1803_v41 = vmul.f32 %v3072_v60, %v1786_v1 }
 0x597   : > { %v1759_v25 = vpop.permute.xlu0 %1758  ;;  %1852 = vst.msk [vmem:[%s2527_s30 + $0x58] sm:$0xff] %vm686_vm2, %v1836_v48  ;;  %v1806_v50 = vmul.f32 %v3072_v60, %v1789_v49 }
 0x598   : > { %v1835_v62 = vadd.f32 %v1819_v35, %v1803_v41  ;;  %v1788_v39 = vmul.f32 %v1759_v25, %v1692_v52  ;;  %v1774_v53 = vpop.permute.xlu1 %1773 }
 0x599   : > { %v1838_v2 = vadd.f32 %v1822_v15, %v1806_v50  ;;  %v1791_v31 = vmul.f32 %v1774_v53, %v1695_v37 }
 0x59a   : > { %1851 = vst.msk [vmem:[%s2527_s30 + $0x50] sm:$0xff] %vm686_vm2, %v1835_v62  ;;  %v1805_v17 = vmul.f32 %v3072_v60, %v1788_v39 }
 0x59b   : > { %v1769_v56 = vpop.permute.xlu0 %1768  ;;  %1854 = vst.msk [vmem:[%s2527_s30 + $0x68] sm:$0xff] %vm686_vm2, %v1838_v2  ;;  %v1808_v12 = vmul.f32 %v3072_v60, %v1791_v31 }
 0x59c   : > { %v1837_v6 = vadd.f32 %v1821_v22, %v1805_v17  ;;  %v1790_v5 = vmul.f32 %v1769_v56, %v1694_v10 }
 0x59d   : > { %v1840_v16 = vadd.f32 %v1824_v20, %v1808_v12 }
 0x59e   : > { %1853 = vst.msk [vmem:[%s2527_s30 + $0x60] sm:$0xff] %vm686_vm2, %v1837_v6  ;;  %v1807_v27 = vmul.f32 %v3072_v60, %v1790_v5 }
 0x59f   : > { %1856 = vst.msk [vmem:[%s2527_s30 + $0x78] sm:$0xff] %vm686_vm2, %v1840_v16 }
 0x5a0   : > { %v1839_v51 = vadd.f32 %v1823_v23, %v1807_v27 }
 0x5a2   : > { %1855 = vst.msk [vmem:[%s2527_s30 + $0x70] sm:$0xff] %vm686_vm2, %v1839_v51 }
 0x5a3 PF: > { %s20_s17 = sadd.s32 1, %s2415_s17   ;;  %s3171_s27 = sld [smem:[#allocation7_spill]] }
 0x5a4   : > { %p17_p11 = scmp.ge.s32.totalorder %s20_s17, 10   ;;  %s3172_s20 = sld [smem:[#allocation8_spill]] }
 0x5a5   : > { %s3173_s11 = smov %s2403_s14  ;;  %s3174_s12 = smov %s2407_s15 }
 0x5a6   : > { %s3175_s13 = smov %s2411_s16  ;;  %s3176_s14 = smov %s3180_s8 }
 0x5a7   :  { %19 = sbr.rel (!%p17_p11) target bundleno = 4 (0x4), region = 97 }
 0x5a9   : > { %s3177_s15 = smov %s3171_s27 }
 0x5aa   : > { %s3178_s16 = smov %s3172_s20 }

</bundles_post_ra>
